<compile_context>
chip_gen: v7x
topology: tpu7x:2x2x1
jax: 0.10.0
libtpu: 0.0.40
codegen_flags: <defaults>
</compile_context>

<pallas_src>
import math
import functools

import jax
import jax.numpy as jnp
from jax import lax
from jax.experimental import pallas as pl
from jax.experimental.pallas import tpu as pltpu


def _pick_tile(dim, candidates):
    """Largest candidate that evenly divides dim; fall back to the full dim."""
    for c in candidates:
        if c <= dim and dim % c == 0:
            return c
    return dim


# ---------------------------------------------------------------------------
# Kernel 1: tiled fused linear  (x2d @ W + b)  for the c_attn projection
# ---------------------------------------------------------------------------
def _linear_kernel(x_ref, w_ref, b_ref, o_ref):
    # bf16 x bf16 -> f32 accumulate on the MXU; bias added once (no K grid axis).
    acc = jnp.dot(x_ref[...], w_ref[...], preferred_element_type=jnp.float32)
    o_ref[...] = (acc + b_ref[...]).astype(o_ref.dtype)


def c_attn_pallas(x2d, w, b, *, tm, tn):
    """x2d: (M, C) bf16, w: (C, N) bf16, b: (N,) f32 -> (M, N) bf16."""
    M, C = x2d.shape
    N = w.shape[1]
    return pl.pallas_call(
        _linear_kernel,
        out_shape=jax.ShapeDtypeStruct((M, N), jnp.bfloat16),
        grid=(M // tm, N // tn),
        in_specs=[
            pl.BlockSpec((tm, C), lambda i, j: (i, 0)),   # x tile, resident across j
            pl.BlockSpec((C, tn), lambda i, j: (0, j)),   # weight column tile
            pl.BlockSpec((1, tn), lambda i, j: (0, j)),   # bias tile
        ],
        out_specs=pl.BlockSpec((tm, tn), lambda i, j: (i, j)),
        compiler_params=pltpu.CompilerParams(
            dimension_semantics=("parallel", "parallel"),
            vmem_limit_bytes=32 * 1024 * 1024,
        ),
    )(x2d, w, b.reshape(1, N))


# ---------------------------------------------------------------------------
# Kernel 2: flash-style causal ReLU-attention, all heads per grid step
# ---------------------------------------------------------------------------
def _relu_attn_kernel(q_ref, k_ref, v_ref, o_ref, acc_ref, *, tq, tkv):
    qi = pl.program_id(1)
    ki = pl.program_id(2)
    nk = pl.num_programs(2)

    @pl.when(ki == 0)
    def _init():
        acc_ref[...] = jnp.zeros_like(acc_ref)

    # Skip KV blocks that lie entirely above the causal diagonal (fully masked).
    @pl.when(ki * tkv <= qi * tq + (tq - 1))
    def _compute():
        q = q_ref[0, 0]   # (H, tq,  hd) bf16, already scaled by 1/sqrt(hd)
        k = k_ref[0, 0]   # (H, tkv, hd) bf16
        v = v_ref[0, 0]   # (H, tkv, hd) bf16

        s = jnp.einsum("hqd,hkd->hqk", q, k,
                       preferred_element_type=jnp.float32)        # (H, tq, tkv) f32

        row = qi * tq + lax.broadcasted_iota(jnp.int32, (tq, tkv), 0)
        col = ki * tkv + lax.broadcasted_iota(jnp.int32, (tq, tkv), 1)
        causal = (col <= row)[None, :, :]

        # masked_fill(-inf) then ReLU  ==  where(causal, relu(s), 0)
        att = jnp.where(causal, jnp.maximum(s, 0.0), 0.0)

        acc_ref[...] += jnp.einsum("hqk,hkd->hqd", att.astype(v.dtype), v,
                                   preferred_element_type=jnp.float32)

    @pl.when(ki == nk - 1)
    def _store():
        o_ref[0] = acc_ref[...].astype(o_ref.dtype)


def relu_attention_pallas(qkvh, *, B, H, T, hd, tq, tkv):
    """qkvh: (3, B, H, T, hd) bf16 -> y: (B, H, T, hd) f32."""
    kern = functools.partial(_relu_attn_kernel, tq=tq, tkv=tkv)
    return pl.pallas_call(
        kern,
        out_shape=jax.ShapeDtypeStruct((B, H, T, hd), jnp.float32),
        grid=(B, T // tq, T // tkv),
        in_specs=[
            pl.BlockSpec((1, 1, H, tq, hd), lambda b, qi, ki: (0, b, 0, qi, 0)),
            pl.BlockSpec((1, 1, H, tkv, hd), lambda b, qi, ki: (1, b, 0, ki, 0)),
            pl.BlockSpec((1, 1, H, tkv, hd), lambda b, qi, ki: (2, b, 0, ki, 0)),
        ],
        out_specs=pl.BlockSpec((1, H, tq, hd), lambda b, qi, ki: (b, 0, qi, 0)),
        scratch_shapes=[pltpu.VMEM((H, tq, hd), jnp.float32)],
        compiler_params=pltpu.CompilerParams(
            dimension_semantics=("parallel", "parallel", "arbitrary"),
            vmem_limit_bytes=32 * 1024 * 1024,
        ),
    )(qkvh, qkvh, qkvh)


# ---------------------------------------------------------------------------
# Full forward pass
# ---------------------------------------------------------------------------
@functools.partial(jax.jit, static_argnames=("n_head",))
def relu_self_attention(x, w_attn, b_attn, n_head):
    B, T, C = x.shape
    hd = C // n_head
    M, N = B * T, 3 * C

    # Fold the 1/sqrt(hd) attention scale into the q projection (exact, zero in-kernel cost).
    scale = 1.0 / math.sqrt(hd)
    w = w_attn.at[:, :C].multiply(scale).astype(jnp.bfloat16)
    bb = b_attn.at[:C].multiply(scale).astype(jnp.float32)

    tm = _pick_tile(M, (1024, 512, 256, 128, 64, 32, 16, 8))
    tn = _pick_tile(N, (768, 512, 384, 256, 128))

    qkv = c_attn_pallas(x.astype(jnp.bfloat16).reshape(M, C), w, bb, tm=tm, tn=tn)  # (M, 3C) bf16

    # (M, 3C) -> (3, B, H, T, hd): the single materialized layout change (bf16, half the bytes).
    qkvh = qkv.reshape(B, T, 3, n_head, hd).transpose(2, 0, 3, 1, 4)

    tq = _pick_tile(T, (256, 128, 64, 32, 16, 8))
    tkv = _pick_tile(T, (256, 128, 64, 32, 16, 8))

    y = relu_attention_pallas(qkvh, B=B, H=n_head, T=T, hd=hd, tq=tq, tkv=tkv)  # (B,H,T,hd) f32
    return y.transpose(0, 2, 1, 3).reshape(B, T, C)

# TODO(synk): c_proj is declared in the PyTorch __init__ but never applied in forward(); omitted.


# Pure-JAX f32 reference (for a silent correctness check)
def _reference(x, w_attn, b_attn, n_head):
    B, T, C = x.shape
    hd = C // n_head
    qkv = x.reshape(B * T, C) @ w_attn + b_attn
    qkv = qkv.reshape(B, T, 3 * C)
    q, k, v = jnp.split(qkv, 3, axis=2)
    q = q.reshape(B, T, n_head, hd).transpose(0, 2, 1, 3)
    k = k.reshape(B, T, n_head, hd).transpose(0, 2, 1, 3)
    v = v.reshape(B, T, n_head, hd).transpose(0, 2, 1, 3)
    att = jnp.einsum("bhqd,bhkd->bhqk", q, k) / math.sqrt(hd)
    mask = jnp.tril(jnp.ones((T, T), dtype=bool))
    att = jnp.where(mask, att, -jnp.inf)
    att = jax.nn.relu(att)
    y = jnp.einsum("bhqk,bhkd->bhqd", att, v)
    return y.transpose(0, 2, 1, 3).reshape(B, T, C)


if __name__ == "__main__":
    # Small shapes consistent with the module (n_embd % n_head == 0).
    B, T = 2, 128
    n_embd, n_head = 128, 4

    key = jax.random.PRNGKey(0)
    kx, kw, kb = jax.random.split(key, 3)

    x = jax.random.normal(kx, (B, T, n_embd), dtype=jnp.float32)

    # c_attn params, stored pre-transposed as (C, 3C) for the x @ W layout.
    bound = 1.0 / math.sqrt(n_embd)
    w_attn = jax.random.uniform(kw, (n_embd, 3 * n_embd), jnp.float32, -bound, bound)
    b_attn = jax.random.uniform(kb, (3 * n_embd,), jnp.float32, -bound, bound)

    y = relu_self_attention(x, w_attn, b_attn, n_head)
    y = jax.block_until_ready(y)

    y_ref = _reference(x, w_attn, b_attn, n_head)
    assert y.shape == (B, T, n_embd)
    max_err = float(jnp.max(jnp.abs(y - y_ref)))
    # bf16 matmul operands (f32 accumulation) -> loosened tolerance vs the f32 reference.
    assert jnp.allclose(y, y_ref, atol=1.5e-1, rtol=1e-1), f"mismatch vs reference: {max_err}"

    print("KERNEL_OK")
</pallas_src>

<mosaic_0001>
module attributes {stable_mosaic.version = 11 : i64} {
  func.func @_linear_kernel(%arg0: i32, %arg1: i32, %arg2: memref<256x128xbf16, #tpu.memory_space<vmem>>, %arg3: memref<128x384xbf16, #tpu.memory_space<vmem>>, %arg4: memref<1x384xf32, #tpu.memory_space<vmem>>, %arg5: memref<256x384xbf16, #tpu.memory_space<vmem>>) attributes {dimension_semantics = [#tpu.dimension_semantics<parallel>, #tpu.dimension_semantics<parallel>], iteration_bounds = array<i64: 1, 1>, scalar_prefetch = 0 : i64, scratch_operands = 0 : i64, tpu.core_type = #tpu.core_type<tc>, window_params = [{transform_indices = @transform_0, window_bounds = array<i64: 256, 128>}, {transform_indices = @transform_1, window_bounds = array<i64: 128, 384>}, {transform_indices = @transform_2, window_bounds = array<i64: 1, 384>}, {transform_indices = @transform_3, window_bounds = array<i64: 256, 384>}]} {
    %c0 = arith.constant 0 : index
    %c0_0 = arith.constant 0 : index
    %0 = vector.load %arg2[%c0, %c0_0] : memref<256x128xbf16, #tpu.memory_space<vmem>>, vector<256x128xbf16>
    %c0_1 = arith.constant 0 : index
    %c0_2 = arith.constant 0 : index
    %1 = vector.load %arg3[%c0_1, %c0_2] : memref<128x384xbf16, #tpu.memory_space<vmem>>, vector<128x384xbf16>
    %cst = arith.constant dense<0.000000e+00> : vector<256x384xf32>
    %2 = tpu.matmul %0, %1, %cst {dimension_numbers = #tpu.dot_dimension_numbers<[1], [0], [0], [1], [0, 0, 1, 1], [], []>} : vector<256x128xbf16>, vector<128x384xbf16>, vector<256x384xf32> -> vector<256x384xf32>
    %c0_3 = arith.constant 0 : index
    %c0_4 = arith.constant 0 : index
    %3 = vector.load %arg4[%c0_3, %c0_4] : memref<1x384xf32, #tpu.memory_space<vmem>>, vector<1x384xf32>
    %4 = vector.broadcast %3 : vector<1x384xf32> to vector<256x384xf32>
    %5 = arith.addf %2, %4 : vector<256x384xf32>
    %6 = arith.truncf %5 : vector<256x384xf32> to vector<256x384xbf16>
    %c0_5 = arith.constant 0 : index
    %c0_6 = arith.constant 0 : index
    %7 = vector.load %arg5[%c0_5, %c0_6] : memref<256x384xbf16, #tpu.memory_space<vmem>>, vector<256x384xbf16>
    tpu.vector_store %arg5[%c0_5, %c0_6], %6 {strides = array<i32>} : memref<256x384xbf16, #tpu.memory_space<vmem>>, vector<256x384xbf16>,
    return
  }
  func.func @transform_0(%arg0: i32, %arg1: i32) -> (i32, i32) {
    %c0_i32 = arith.constant 0 : i32
    %c0_i32_0 = arith.constant 0 : i32
    return %arg0, %c0_i32 : i32, i32
  }
  func.func @transform_1(%arg0: i32, %arg1: i32) -> (i32, i32) {
    %c0_i32 = arith.constant 0 : i32
    %c0_i32_0 = arith.constant 0 : i32
    return %c0_i32, %arg1 : i32, i32
  }
  func.func @transform_2(%arg0: i32, %arg1: i32) -> (i32, i32) {
    %c0_i32 = arith.constant 0 : i32
    %c0_i32_0 = arith.constant 0 : i32
    return %c0_i32, %arg1 : i32, i32
  }
  func.func @transform_3(%arg0: i32, %arg1: i32) -> (i32, i32) {
    %c0_i32 = arith.constant 0 : i32
    return %arg0, %arg1 : i32, i32
  }
}

module attributes {stable_mosaic.version = 11 : i64} {
  func.func @_relu_attn_kernel(%arg0: i32, %arg1: i32, %arg2: i32, %arg3: memref<1x1x4x128x32xbf16, #tpu.memory_space<vmem>>, %arg4: memref<1x1x4x128x32xbf16, #tpu.memory_space<vmem>>, %arg5: memref<1x1x4x128x32xbf16, #tpu.memory_space<vmem>>, %arg6: memref<1x4x128x32xf32, #tpu.memory_space<vmem>>, %arg7: memref<4x128x32xf32, #tpu.memory_space<vmem>>) attributes {dimension_semantics = [#tpu.dimension_semantics<parallel>, #tpu.dimension_semantics<parallel>, #tpu.dimension_semantics<arbitrary>], iteration_bounds = array<i64: 2, 1, 1>, scalar_prefetch = 0 : i64, scratch_operands = 1 : i64, tpu.core_type = #tpu.core_type<tc>, window_params = [{transform_indices = @transform_0, window_bounds = array<i64: 1, 1, 4, 128, 32>}, {transform_indices = @transform_1, window_bounds = array<i64: 1, 1, 4, 128, 32>}, {transform_indices = @transform_2, window_bounds = array<i64: 1, 1, 4, 128, 32>}, {transform_indices = @transform_3, window_bounds = array<i64: 1, 4, 128, 32>}]} {
    %c0_i32 = arith.constant 0 : i32
    %0 = arith.cmpi eq, %arg2, %c0_i32 : i32
    %1 = arith.extui %0 : i1 to i32
    %c0_i32_0 = arith.constant 0 : i32
    %2 = arith.cmpi ne, %1, %c0_i32_0 : i32
    scf.if %2 {
      %cst = arith.constant 0.000000e+00 : f32
      %12 = vector.broadcast %cst : f32 to vector<4x128x32xf32>
      %c0 = arith.constant 0 : index
      %c0_5 = arith.constant 0 : index
      %c0_6 = arith.constant 0 : index
      %13 = vector.load %arg7[%c0, %c0_5, %c0_6] : memref<4x128x32xf32, #tpu.memory_space<vmem>>, vector<4x128x32xf32>
      tpu.vector_store %arg7[%c0, %c0_5, %c0_6], %12 {strides = array<i32>} : memref<4x128x32xf32, #tpu.memory_space<vmem>>, vector<4x128x32xf32>,
    } else {
    }
    %c128_i32 = arith.constant 128 : i32
    %3 = arith.muli %arg2, %c128_i32 : i32
    %c128_i32_1 = arith.constant 128 : i32
    %4 = arith.muli %arg1, %c128_i32_1 : i32
    %c127_i32 = arith.constant 127 : i32
    %5 = arith.addi %4, %c127_i32 : i32
    %6 = arith.cmpi sle, %3, %5 : i32
    %7 = arith.extui %6 : i1 to i32
    %c0_i32_2 = arith.constant 0 : i32
    %8 = arith.cmpi ne, %7, %c0_i32_2 : i32
    scf.if %8 {
      %c0 = arith.constant 0 : index
      %c0_5 = arith.constant 0 : index
      %c0_6 = arith.constant 0 : index
      %c0_7 = arith.constant 0 : index
      %c0_8 = arith.constant 0 : index
      %12 = vector.load %arg3[%c0, %c0_5, %c0_6, %c0_7, %c0_8] : memref<1x1x4x128x32xbf16, #tpu.memory_space<vmem>>, vector<1x1x4x128x32xbf16>
      %13 = vector.shape_cast %12 : vector<1x1x4x128x32xbf16> to vector<4x128x32xbf16>
      %c0_9 = arith.constant 0 : index
      %c0_10 = arith.constant 0 : index
      %c0_11 = arith.constant 0 : index
      %c0_12 = arith.constant 0 : index
      %c0_13 = arith.constant 0 : index
      %14 = vector.load %arg4[%c0_9, %c0_10, %c0_11, %c0_12, %c0_13] : memref<1x1x4x128x32xbf16, #tpu.memory_space<vmem>>, vector<1x1x4x128x32xbf16>
      %15 = vector.shape_cast %14 : vector<1x1x4x128x32xbf16> to vector<4x128x32xbf16>
      %c0_14 = arith.constant 0 : index
      %c0_15 = arith.constant 0 : index
      %c0_16 = arith.constant 0 : index
      %c0_17 = arith.constant 0 : index
      %c0_18 = arith.constant 0 : index
      %16 = vector.load %arg5[%c0_14, %c0_15, %c0_16, %c0_17, %c0_18] : memref<1x1x4x128x32xbf16, #tpu.memory_space<vmem>>, vector<1x1x4x128x32xbf16>
      %17 = vector.shape_cast %16 : vector<1x1x4x128x32xbf16> to vector<4x128x32xbf16>
      "tpu.trace_start"() <{level = 10 : i32, message = "hqd,hkd->hqk"}> : () -> ()
      %cst = arith.constant dense<0.000000e+00> : vector<4x128x128xf32>
      %18 = tpu.matmul %13, %15, %cst {dimension_numbers = #tpu.dot_dimension_numbers<[2], [2], [1], [1], [0, 0, 0, 1, 1, 1], [0], [0]>} : vector<4x128x32xbf16>, vector<4x128x32xbf16>, vector<4x128x128xf32> -> vector<4x128x128xf32>
      "tpu.trace_stop"() : () -> ()
      %c128_i32_19 = arith.constant 128 : i32
      %19 = arith.muli %arg1, %c128_i32_19 : i32
      %20 = tpu.iota {dimensions = array<i32: 0>} : vector<128x128xi32>
      %21 = vector.broadcast %19 : i32 to vector<128x128xi32>
      %22 = arith.addi %21, %20 : vector<128x128xi32>
      %c128_i32_20 = arith.constant 128 : i32
      %23 = arith.muli %arg2, %c128_i32_20 : i32
      %24 = tpu.iota {dimensions = array<i32: 1>} : vector<128x128xi32>
      %25 = vector.broadcast %23 : i32 to vector<128x128xi32>
      %26 = arith.addi %25, %24 : vector<128x128xi32>
      %27 = arith.cmpi sle, %26, %22 : vector<128x128xi32>
      %28 = vector.shape_cast %27 : vector<128x128xi1> to vector<1x128x128xi1>
      %cst_21 = arith.constant 0.000000e+00 : f32
      %29 = vector.broadcast %cst_21 : f32 to vector<4x128x128xf32>
      %30 = arith.maximumf %18, %29 : vector<4x128x128xf32>
      %cst_22 = arith.constant 0.000000e+00 : f32
      %31 = vector.shape_cast %28 : vector<1x128x128xi1> to vector<1x128x128xi1>
      %32 = vector.broadcast %31 : vector<1x128x128xi1> to vector<4x128x128xi1>
      %33 = vector.broadcast %cst_22 : f32 to vector<4x128x128xf32>
      %34 = arith.select %32, %30, %33 : vector<4x128x128xi1>, vector<4x128x128xf32>
      %c0_23 = arith.constant 0 : index
      %c0_24 = arith.constant 0 : index
      %c0_25 = arith.constant 0 : index
      %35 = vector.load %arg7[%c0_23, %c0_24, %c0_25] : memref<4x128x32xf32, #tpu.memory_space<vmem>>, vector<4x128x32xf32>
      %36 = arith.truncf %34 : vector<4x128x128xf32> to vector<4x128x128xbf16>
      "tpu.trace_start"() <{level = 10 : i32, message = "hqk,hkd->hqd"}> : () -> ()
      %cst_26 = arith.constant dense<0.000000e+00> : vector<4x128x32xf32>
      %37 = tpu.matmul %36, %17, %cst_26 {dimension_numbers = #tpu.dot_dimension_numbers<[2], [1], [1], [2], [0, 0, 0, 1, 1, 2], [0], [0]>} : vector<4x128x128xbf16>, vector<4x128x32xbf16>, vector<4x128x32xf32> -> vector<4x128x32xf32>
      "tpu.trace_stop"() : () -> ()
      %38 = arith.addf %35, %37 : vector<4x128x32xf32>
      %c0_27 = arith.constant 0 : index
      %c0_28 = arith.constant 0 : index
      %c0_29 = arith.constant 0 : index
      %39 = vector.load %arg7[%c0_27, %c0_28, %c0_29] : memref<4x128x32xf32, #tpu.memory_space<vmem>>, vector<4x128x32xf32>
      tpu.vector_store %arg7[%c0_27, %c0_28, %c0_29], %38 {strides = array<i32>} : memref<4x128x32xf32, #tpu.memory_space<vmem>>, vector<4x128x32xf32>,
    } else {
    }
    %c0_i32_3 = arith.constant 0 : i32
    %9 = arith.cmpi eq, %arg2, %c0_i32_3 : i32
    %10 = arith.extui %9 : i1 to i32
    %c0_i32_4 = arith.constant 0 : i32
    %11 = arith.cmpi ne, %10, %c0_i32_4 : i32
    scf.if %11 {
      %c0 = arith.constant 0 : index
      %c0_5 = arith.constant 0 : index
      %c0_6 = arith.constant 0 : index
      %12 = vector.load %arg7[%c0, %c0_5, %c0_6] : memref<4x128x32xf32, #tpu.memory_space<vmem>>, vector<4x128x32xf32>
      %c0_7 = arith.constant 0 : index
      %c0_8 = arith.constant 0 : index
      %c0_9 = arith.constant 0 : index
      %c0_10 = arith.constant 0 : index
      %13 = vector.load %arg6[%c0_7, %c0_8, %c0_9, %c0_10] : memref<1x4x128x32xf32, #tpu.memory_space<vmem>>, vector<1x4x128x32xf32>
      %14 = vector.shape_cast %13 : vector<1x4x128x32xf32> to vector<4x128x32xf32>
      %15 = vector.shape_cast %12 : vector<4x128x32xf32> to vector<1x4x128x32xf32>
      tpu.vector_store %arg6[%c0_7, %c0_8, %c0_9, %c0_10], %15 {strides = array<i32>} : memref<1x4x128x32xf32, #tpu.memory_space<vmem>>, vector<1x4x128x32xf32>,
    } else {
    }
    return
  }
  func.func @transform_0(%arg0: i32, %arg1: i32, %arg2: i32) -> (i32, i32, i32, i32, i32) {
    %c0_i32 = arith.constant 0 : i32
    %c0_i32_0 = arith.constant 0 : i32
    %c0_i32_1 = arith.constant 0 : i32
    %c0_i32_2 = arith.constant 0 : i32
    return %c0_i32, %arg0, %c0_i32_0, %arg1, %c0_i32_1 : i32, i32, i32, i32, i32
  }
  func.func @transform_1(%arg0: i32, %arg1: i32, %arg2: i32) -> (i32, i32, i32, i32, i32) {
    %c1_i32 = arith.constant 1 : i32
    %c0_i32 = arith.constant 0 : i32
    %c0_i32_0 = arith.constant 0 : i32
    %c0_i32_1 = arith.constant 0 : i32
    return %c1_i32, %arg0, %c0_i32, %arg2, %c0_i32_0 : i32, i32, i32, i32, i32
  }
  func.func @transform_2(%arg0: i32, %arg1: i32, %arg2: i32) -> (i32, i32, i32, i32, i32) {
    %c2_i32 = arith.constant 2 : i32
    %c0_i32 = arith.constant 0 : i32
    %c0_i32_0 = arith.constant 0 : i32
    %c0_i32_1 = arith.constant 0 : i32
    return %c2_i32, %arg0, %c0_i32, %arg2, %c0_i32_0 : i32, i32, i32, i32, i32
  }
  func.func @transform_3(%arg0: i32, %arg1: i32, %arg2: i32) -> (i32, i32, i32, i32) {
    %c0_i32 = arith.constant 0 : i32
    %c0_i32_0 = arith.constant 0 : i32
    %c0_i32_1 = arith.constant 0 : i32
    return %arg0, %c0_i32, %arg1, %c0_i32_0 : i32, i32, i32, i32
  }
}

</mosaic_0001>

<bundles_post_ra>
// kernel: relu_self_attention.2
= control target key start
LH: loop header
LB: loop body
LE: loop exit
PB: predicated region body
PF: predicated region fallthrough
CT: control target
= control target key end

     0   :  { %v1367_v1 = vmov 0   ;;  %v81_v41 = vlaneseq  ;;  %s1839_s1 = inlined_call_operand.vmem [shape: bf16[128,384], index: 1, kind: input, shape index: {}]   ;;  %s1840_s0 = inlined_call_operand.vmem [shape: bf16[256,128], index: 0, kind: input, shape index: {}]   ;;  %s1841_s2 = inlined_call_operand.vmem [shape: f32[1,384], index: 2, kind: input, shape index: {}]   ;;  %s1842_s3 = inlined_call_operand.vmem [shape: bf16[256,384], index: 3, kind: output, shape index: {}]  }
   0x1   :  { %v1319_v0 = vld [vmem:[%s1839_s1 + $0x4] ss:$12 sps:$4 sm:$0xff]   ;;  %352 = vmatprep.mubr.bf16.mxu0 %v1367_v1  ;;  %472 = vmatprep.mubr.bf16.mxu1 %v1367_v1  ;;  %v1321_v2 = vld [vmem:[%s1839_s1] ss:$12 sps:$4 sm:$0xff]   ;;  %v1322_v3 = vld [vmem:[%s1839_s1 + $0x1c] ss:$12 sps:$4 sm:$0xff]  }
   0x2   :  { %320 = vmatprep.subr.bf16.mxu0 %v1319_v0  ;;  %1302 = vmatprep.subr.bf16.mxu1 %v1319_v0  ;;  %v1324_v4 = vld [vmem:[%s1839_s1 + $0x18] ss:$12 sps:$4 sm:$0xff]   ;;  %v1325_v5 = vld [vmem:[%s1839_s1 + $0x34] ss:$12 sps:$4 sm:$0xff]   ;;  %v1327_v6 = vld [vmem:[%s1839_s1 + $0x30] ss:$12 sps:$4 sm:$0xff]  }
   0x3   :  { %321 = vmatpush1.bf16.msra.mxu0 %v1321_v2  ;;  %1310 = vmatpush1.bf16.msra.mxu1 %v1321_v2  ;;  %v1328_v7 = vld [vmem:[%s1839_s1 + $0x4c] ss:$12 sps:$4 sm:$0xff]   ;;  %v1330_v8 = vld [vmem:[%s1839_s1 + $0x48] ss:$12 sps:$4 sm:$0xff]   ;;  %v1331_v9 = vld [vmem:[%s1839_s1 + $0x64] ss:$12 sps:$4 sm:$0xff]  }
   0x4   :  { %322 = vmatprep.subr.bf16.mxu0 %v1322_v3  ;;  %1303 = vmatprep.subr.bf16.mxu1 %v1322_v3  ;;  %v1333_v10 = vld [vmem:[%s1839_s1 + $0x60] ss:$12 sps:$4 sm:$0xff]   ;;  %v1334_v11 = vld [vmem:[%s1839_s1 + $0x7c] ss:$12 sps:$4 sm:$0xff]   ;;  %v1336_v12 = vld [vmem:[%s1839_s1 + $0x78] ss:$12 sps:$4 sm:$0xff]  }
   0x5   :  { %v1337_v13 = vld [vmem:[%s1839_s1 + $0x94] ss:$12 sps:$4 sm:$0xff]   ;;  %v1339_v14 = vld [vmem:[%s1839_s1 + $0x90] ss:$12 sps:$4 sm:$0xff]   ;;  %v1340_v15 = vld [vmem:[%s1839_s1 + $0xac] ss:$12 sps:$4 sm:$0xff]  }
   0x6   :  { %v1342_v16 = vld [vmem:[%s1839_s1 + $0xa8] ss:$12 sps:$4 sm:$0xff]   ;;  %v1343_v18 = vld [vmem:[%s1840_s0] sm:$0xff]   ;;  %v1350_v24 = vld [vmem:[%s1839_s1 + $0x50] ss:$12 sps:$4 sm:$0xff]   ;;  %v1532_v42 = vshrl.u32 %v81_v41, 7 }
   0x7   :  { %323 = vmatpush1.bf16.msra.mxu0 %v1324_v4  ;;  %1311 = vmatpush1.bf16.msra.mxu1 %v1324_v4  ;;  %v1345_v17 = vld [vmem:[%s1839_s1 + $0x8] ss:$12 sps:$4 sm:$0xff]   ;;  %v1447_v19 = vld [vmem:[%s1840_s0 + $0x60] sm:$0xff]   ;;  %v1355_v30 = vld [vmem:[%s1840_s0 + $0x18] sm:$0xff]  }
   0x8   :  { %324 = vmatprep.subr.bf16.mxu0 %v1325_v5  ;;  %1304 = vmatprep.subr.bf16.mxu1 %v1325_v5  ;;  %v1346_v20 = vld [vmem:[%s1839_s1 + $0x20] ss:$12 sps:$4 sm:$0xff]   ;;  %v1349_v21 = vld [vmem:[%s1839_s1 + $0x38] ss:$12 sps:$4 sm:$0xff]   ;;  %v1353_v25 = vld [vmem:[%s1839_s1 + $0x68] ss:$12 sps:$4 sm:$0xff]  }
   0x9   :  { %v1347_v22 = vld [vmem:[%s1840_s0 + $0x8] sm:$0xff]   ;;  %v1351_v26 = vld [vmem:[%s1840_s0 + $0x10] sm:$0xff]   ;;  %v1357_v29 = vld [vmem:[%s1839_s1 + $0x98] ss:$12 sps:$4 sm:$0xff]   ;;  %v83_v43 = vsub.s32 0, %v1532_v42  ;;  %v87_v45 = vsub.s32 1, %v1532_v42 }
   0xa   :  { %v1464_v23 = vld [vmem:[%s1840_s0 + $0x68] sm:$0xff]   ;;  %v1352_v27 = vld [vmem:[%s1840_s0 + $0x70] sm:$0xff]   ;;  %v1356_v31 = vld [vmem:[%s1840_s0 + $0x78] sm:$0xff]  }
   0xb   :  { %325 = vmatpush1.bf16.msra.mxu0 %v1327_v6  ;;  %1312 = vmatpush1.bf16.msra.mxu1 %v1327_v6  ;;  %v1354_v28 = vld [vmem:[%s1839_s1 + $0x80] ss:$12 sps:$4 sm:$0xff]   ;;  %v1358_v32 = vld [vmem:[%s1839_s1 + $0xb0] ss:$12 sps:$4 sm:$0xff]  }
   0xc   :  { %326 = vmatprep.subr.bf16.mxu0 %v1328_v7  ;;  %1305 = vmatprep.subr.bf16.mxu1 %v1328_v7  ;;  %v1359_v33 = vld [vmem:[%s1840_s0 + $0x20] sm:$0xff]   ;;  %v1360_v34 = vld [vmem:[%s1840_s0 + $0x28] sm:$0xff]   ;;  %v1361_v35 = vld [vmem:[%s1840_s0 + $0x30] sm:$0xff]  }
   0xd   :  { %v1362_v36 = vld [vmem:[%s1840_s0 + $0x38] sm:$0xff]   ;;  %v1363_v37 = vld [vmem:[%s1840_s0 + $0x40] sm:$0xff]   ;;  %v1364_v38 = vld [vmem:[%s1840_s0 + $0x48] sm:$0xff]  }
   0xe   :  { %v1365_v39 = vld [vmem:[%s1840_s0 + $0x50] sm:$0xff]   ;;  %v1366_v40 = vld [vmem:[%s1840_s0 + $0x58] sm:$0xff]   ;;  %v1538_v44 = vld [vmem:[%s1841_s2] sm:$0x7] }
   0xf   :  { %327 = vmatpush1.bf16.msra.mxu0 %v1330_v8  ;;  %1313 = vmatpush1.bf16.msra.mxu1 %v1330_v8  ;;  %v1542_v46 = vrot.slane %v1538_v44, %v83_v43  ;;  %v1545_v47 = vrot.slane %v1538_v44, %v87_v45 }
  0x10   :  { %328 = vmatprep.subr.bf16.mxu0 %v1331_v9  ;;  %1306 = vmatprep.subr.bf16.mxu1 %v1331_v9 }
  0x13   :  { %329 = vmatpush1.bf16.msra.mxu0 %v1333_v10  ;;  %1314 = vmatpush1.bf16.msra.mxu1 %v1333_v10 }
  0x14   :  { %330 = vmatprep.subr.bf16.mxu0 %v1334_v11  ;;  %1307 = vmatprep.subr.bf16.mxu1 %v1334_v11 }
  0x17   :  { %331 = vmatpush1.bf16.msra.mxu0 %v1336_v12  ;;  %1315 = vmatpush1.bf16.msra.mxu1 %v1336_v12 }
  0x18   :  { %332 = vmatprep.subr.bf16.mxu0 %v1337_v13  ;;  %1308 = vmatprep.subr.bf16.mxu1 %v1337_v13 }
  0x1b   :  { %333 = vmatpush1.bf16.msra.mxu0 %v1339_v14  ;;  %1316 = vmatpush1.bf16.msra.mxu1 %v1339_v14 }
  0x1c   :  { %334 = vmatprep.subr.bf16.mxu0 %v1340_v15  ;;  %1309 = vmatprep.subr.bf16.mxu1 %v1340_v15 }
  0x1f   :  { %335 = vmatpush1.bf16.msra.mxu0 %v1342_v16  ;;  %1317 = vmatpush1.bf16.msra.mxu1 %v1342_v16 }
  0x20   :  { %1254 = vmatprep.subr.bf16.mxu1 %v1345_v17 }
  0x22   :  { %353 = vmatmul.mubr.bf16.vlgmr.msra.gmra.mrb[0].mxu0 %v1343_v18  ;;  %473 = vmatmul.mubr.bf16.vlgmr.msra.gmra.mrb[0].mxu1 %v1447_v19 }
  0x23   :  { %1255 = vmatpush3.bf16.msra.mxu1 %v1345_v17  ;;  %362 = vmatprep.mubr.bf16.mxu0 %v1367_v1 }
  0x24   :  { %1256 = vmatprep.subr.bf16.mxu1 %v1346_v20  ;;  %482 = vmatprep.mubr.bf16.mxu1 %v1367_v1 }
  0x27   :  { %1257 = vmatpush3.bf16.msra.mxu1 %v1346_v20 }
  0x28   :  { %1258 = vmatprep.subr.bf16.mxu1 %v1349_v21 }
  0x2a   :  { %363 = vmatmul.mubr.bf16.gmra.mrb[4].mxu0 %v1347_v22  ;;  %483 = vmatmul.mubr.bf16.gmra.mrb[4].mxu1 %v1464_v23 }
  0x2b   :  { %1259 = vmatpush3.bf16.msra.mxu1 %v1349_v21  ;;  %372 = vmatprep.mubr.bf16.mxu0 %v1367_v1 }
  0x2c   :  { %1260 = vmatprep.subr.bf16.mxu1 %v1350_v24  ;;  %492 = vmatprep.mubr.bf16.mxu1 %v1367_v1 }
  0x2f   :  { %1261 = vmatpush3.bf16.msra.mxu1 %v1350_v24 }
  0x30   :  { %1262 = vmatprep.subr.bf16.mxu1 %v1353_v25 }
  0x32   :  { %373 = vmatmul.mubr.bf16.gmra.mrb[8].mxu0 %v1351_v26  ;;  %493 = vmatmul.mubr.bf16.gmra.mrb[8].mxu1 %v1352_v27 }
  0x33   :  { %1263 = vmatpush3.bf16.msra.mxu1 %v1353_v25  ;;  %382 = vmatprep.mubr.bf16.mxu0 %v1367_v1 }
  0x34   :  { %1264 = vmatprep.subr.bf16.mxu1 %v1354_v28  ;;  %502 = vmatprep.mubr.bf16.mxu1 %v1367_v1 }
  0x37   :  { %1265 = vmatpush3.bf16.msra.mxu1 %v1354_v28 }
  0x38   :  { %1266 = vmatprep.subr.bf16.mxu1 %v1357_v29 }
  0x3a   :  { %383 = vmatmul.mubr.bf16.gmra.mrb[12].mxu0 %v1355_v30  ;;  %503 = vmatmul.mubr.bf16.gmra.mrb[12].mxu1 %v1356_v31 }
  0x3b   :  { %1267 = vmatpush3.bf16.msra.mxu1 %v1357_v29  ;;  %392 = vmatprep.mubr.bf16.mxu0 %v1367_v1 }
  0x3c   :  { %1268 = vmatprep.subr.bf16.mxu1 %v1358_v32  ;;  %1270 = vmatprep.mubr.bf16.mxu1 %v1343_v18 }
  0x3f   :  { %1269 = vmatpush3.bf16.msra.mxu1 %v1358_v32 }
  0x42   :  { %393 = vmatmul.mubr.bf16.gmra.mrb[16].mxu0 %v1359_v33  ;;  %1271 = vmatmul.mubr.bf16.vlgmr.msra.gmra.mrb[16].mxu1 %v1347_v22 }
  0x43   :  { %402 = vmatprep.mubr.bf16.mxu0 %v1367_v1  ;;  %1274 = vmatprep.mubr.bf16.mxu1 %v1351_v26 }
  0x4a   :  { %403 = vmatmul.mubr.bf16.gmra.mrb[20].mxu0 %v1360_v34  ;;  %1275 = vmatmul.mubr.bf16.gmra.mrb[20].mxu1 %v1355_v30 }
  0x4b   :  { %412 = vmatprep.mubr.bf16.mxu0 %v1367_v1  ;;  %1278 = vmatprep.mubr.bf16.mxu1 %v1359_v33 }
  0x52   :  { %413 = vmatmul.mubr.bf16.gmra.mrb[24].mxu0 %v1361_v35  ;;  %1279 = vmatmul.mubr.bf16.gmra.mrb[24].mxu1 %v1360_v34 }
  0x53   :  { %422 = vmatprep.mubr.bf16.mxu0 %v1367_v1  ;;  %1282 = vmatprep.mubr.bf16.mxu1 %v1361_v35 }
  0x5a   :  { %423 = vmatmul.mubr.bf16.gmra.mrb[28].mxu0 %v1362_v36  ;;  %1283 = vmatmul.mubr.bf16.gmra.mrb[28].mxu1 %v1362_v36 }
  0x5b   :  { %432 = vmatprep.mubr.bf16.mxu0 %v1367_v1  ;;  %1286 = vmatprep.mubr.bf16.mxu1 %v1363_v37 }
  0x62   :  { %433 = vmatmul.mubr.bf16.gmra.mrb[32].mxu0 %v1363_v37  ;;  %1287 = vmatmul.mubr.bf16.gmra.mrb[32].mxu1 %v1364_v38 }
  0x63   :  { %442 = vmatprep.mubr.bf16.mxu0 %v1367_v1  ;;  %1290 = vmatprep.mubr.bf16.mxu1 %v1365_v39 }
  0x6a   :  { %443 = vmatmul.mubr.bf16.gmra.mrb[36].mxu0 %v1364_v38  ;;  %1291 = vmatmul.mubr.bf16.gmra.mrb[36].mxu1 %v1366_v40 }
  0x6b   :  { %452 = vmatprep.mubr.bf16.mxu0 %v1367_v1  ;;  %1294 = vmatprep.mubr.bf16.mxu1 %v1447_v19 }
  0x72   :  { %453 = vmatmul.mubr.bf16.gmra.mrb[40].mxu0 %v1365_v39  ;;  %1295 = vmatmul.mubr.bf16.gmra.mrb[40].mxu1 %v1464_v23 }
  0x73   :  { %462 = vmatprep.mubr.bf16.mxu0 %v1367_v1  ;;  %1298 = vmatprep.mubr.bf16.mxu1 %v1352_v27 }
  0x7a   :  { %463 = vmatmul.mubr.bf16.gmra.mrb[44].mxu0 %v1366_v40  ;;  %1299 = vmatmul.mubr.bf16.gmra.mrb[44].mxu1 %v1356_v31 }
  0xf5   :  { %v354_v48 = vpop.f32.mrb[0].mxu0  ;;  %v474_v49 = vpop.f32.mrb[0].mxu1 }
  0xf6   :  { %v355_v50 = vadd.f32 %v354_v48, %v1542_v46  ;;  %v475_v51 = vadd.f32 %v474_v49, %v1542_v46  ;;  %v356_v52 = vpop.f32.mrb[1].mxu0  ;;  %v476_v53 = vpop.f32.mrb[1].mxu1 }
  0xf7   :  { %v357_v54 = vadd.f32 %v356_v52, %v1545_v47  ;;  %v477_v55 = vadd.f32 %v476_v53, %v1545_v47  ;;  %v358_v56 = vpop.f32.mrb[2].mxu0  ;;  %v478_v57 = vpop.f32.mrb[2].mxu1 }
  0xf8   :  { %v359_v58 = vadd.f32 %v358_v56, %v1542_v46  ;;  %v479_v59 = vadd.f32 %v478_v57, %v1542_v46  ;;  %v360_v60 = vpop.f32.mrb[3].mxu0  ;;  %v480_v61 = vpop.f32.mrb[3].mxu1 }
  0xf9   :  { %v1166_v62 = vpack.c.bf16 %v357_v54, %v355_v50  ;;  %v1214_v63 = vpack.c.bf16 %v477_v55, %v475_v51  ;;  %v361_v0 = vadd.f32 %v360_v60, %v1545_v47  ;;  %v481_v1 = vadd.f32 %v480_v61, %v1545_v47 }
  0xfa   :  { %v91_v54 = vsub.s32 2, %v1532_v42 }
  0xfb   :  { %994 = vst [vmem:[%s1842_s3] sm:$0xff] %v1166_v62  ;;  %1042 = vst [vmem:[%s1842_s3 + $0x120] sm:$0xff] %v1214_v63  ;;  %v1168_v2 = vpack.c.bf16 %v361_v0, %v359_v58  ;;  %v1216_v3 = vpack.c.bf16 %v481_v1, %v479_v59 }
  0xfc   :  { %v1617_v42 = vrot.slane %v1538_v44, %v91_v54 }
  0xfd   :  { %996 = vst [vmem:[%s1842_s3 + $0xc] sm:$0xff] %v1168_v2  ;;  %1044 = vst [vmem:[%s1842_s3 + $0x12c] sm:$0xff] %v1216_v3  ;;  %v364_v4 = vpop.f32.mrb[4].mxu0  ;;  %v484_v5 = vpop.f32.mrb[4].mxu1 }
  0xfe   :  { %v365_v6 = vadd.f32 %v364_v4, %v1542_v46  ;;  %v485_v7 = vadd.f32 %v484_v5, %v1542_v46  ;;  %v366_v8 = vpop.f32.mrb[5].mxu0  ;;  %v486_v9 = vpop.f32.mrb[5].mxu1 }
  0xff   :  { %v367_v10 = vadd.f32 %v366_v8, %v1545_v47  ;;  %v487_v11 = vadd.f32 %v486_v9, %v1545_v47  ;;  %v368_v12 = vpop.f32.mrb[6].mxu0  ;;  %v488_v13 = vpop.f32.mrb[6].mxu1 }
 0x100   :  { %v369_v14 = vadd.f32 %v368_v12, %v1542_v46  ;;  %v489_v15 = vadd.f32 %v488_v13, %v1542_v46  ;;  %v370_v16 = vpop.f32.mrb[7].mxu0  ;;  %v490_v17 = vpop.f32.mrb[7].mxu1 }
 0x101   :  { %v1170_v18 = vpack.c.bf16 %v367_v10, %v365_v6  ;;  %v1218_v19 = vpack.c.bf16 %v487_v11, %v485_v7  ;;  %v371_v20 = vadd.f32 %v370_v16, %v1545_v47  ;;  %v491_v21 = vadd.f32 %v490_v17, %v1545_v47 }
 0x103   :  { %998 = vst [vmem:[%s1842_s3 + $0x18] sm:$0xff] %v1170_v18  ;;  %1046 = vst [vmem:[%s1842_s3 + $0x138] sm:$0xff] %v1218_v19  ;;  %v1172_v22 = vpack.c.bf16 %v371_v20, %v369_v14  ;;  %v1220_v23 = vpack.c.bf16 %v491_v21, %v489_v15 }
 0x105   :  { %1000 = vst [vmem:[%s1842_s3 + $0x24] sm:$0xff] %v1172_v22  ;;  %1048 = vst [vmem:[%s1842_s3 + $0x144] sm:$0xff] %v1220_v23  ;;  %v374_v24 = vpop.f32.mrb[8].mxu0  ;;  %v494_v25 = vpop.f32.mrb[8].mxu1 }
 0x106   :  { %v375_v26 = vadd.f32 %v374_v24, %v1542_v46  ;;  %v495_v27 = vadd.f32 %v494_v25, %v1542_v46  ;;  %v376_v28 = vpop.f32.mrb[9].mxu0  ;;  %v496_v29 = vpop.f32.mrb[9].mxu1 }
 0x107   :  { %v377_v30 = vadd.f32 %v376_v28, %v1545_v47  ;;  %v497_v31 = vadd.f32 %v496_v29, %v1545_v47  ;;  %v378_v32 = vpop.f32.mrb[10].mxu0  ;;  %v498_v33 = vpop.f32.mrb[10].mxu1 }
 0x108   :  { %v379_v34 = vadd.f32 %v378_v32, %v1542_v46  ;;  %v499_v35 = vadd.f32 %v498_v33, %v1542_v46  ;;  %v380_v36 = vpop.f32.mrb[11].mxu0  ;;  %v500_v37 = vpop.f32.mrb[11].mxu1 }
 0x109   :  { %v1174_v38 = vpack.c.bf16 %v377_v30, %v375_v26  ;;  %v1222_v39 = vpack.c.bf16 %v497_v31, %v495_v27  ;;  %v381_v40 = vadd.f32 %v380_v36, %v1545_v47  ;;  %v501_v41 = vadd.f32 %v500_v37, %v1545_v47 }
 0x10b   :  { %1002 = vst [vmem:[%s1842_s3 + $0x30] sm:$0xff] %v1174_v38  ;;  %1050 = vst [vmem:[%s1842_s3 + $0x150] sm:$0xff] %v1222_v39  ;;  %v1176_v43 = vpack.c.bf16 %v381_v40, %v379_v34  ;;  %v1224_v45 = vpack.c.bf16 %v501_v41, %v499_v35 }
 0x10d   :  { %1004 = vst [vmem:[%s1842_s3 + $0x3c] sm:$0xff] %v1176_v43  ;;  %1052 = vst [vmem:[%s1842_s3 + $0x15c] sm:$0xff] %v1224_v45  ;;  %v384_v48 = vpop.f32.mrb[12].mxu0  ;;  %v504_v49 = vpop.f32.mrb[12].mxu1 }
 0x10e   :  { %v385_v50 = vadd.f32 %v384_v48, %v1542_v46  ;;  %v505_v51 = vadd.f32 %v504_v49, %v1542_v46  ;;  %v386_v52 = vpop.f32.mrb[13].mxu0  ;;  %v506_v53 = vpop.f32.mrb[13].mxu1 }
 0x10f   :  { %v387_v55 = vadd.f32 %v386_v52, %v1545_v47  ;;  %v507_v56 = vadd.f32 %v506_v53, %v1545_v47  ;;  %v388_v57 = vpop.f32.mrb[14].mxu0  ;;  %v508_v58 = vpop.f32.mrb[14].mxu1 }
 0x110   :  { %v389_v59 = vadd.f32 %v388_v57, %v1542_v46  ;;  %v509_v60 = vadd.f32 %v508_v58, %v1542_v46  ;;  %v390_v61 = vpop.f32.mrb[15].mxu0  ;;  %v510_v62 = vpop.f32.mrb[15].mxu1 }
 0x111   :  { %v1178_v63 = vpack.c.bf16 %v387_v55, %v385_v50  ;;  %v1226_v0 = vpack.c.bf16 %v507_v56, %v505_v51  ;;  %v391_v1 = vadd.f32 %v390_v61, %v1545_v47  ;;  %v511_v2 = vadd.f32 %v510_v62, %v1545_v47 }
 0x113   :  { %1006 = vst [vmem:[%s1842_s3 + $0x48] sm:$0xff] %v1178_v63  ;;  %1054 = vst [vmem:[%s1842_s3 + $0x168] sm:$0xff] %v1226_v0  ;;  %v1180_v3 = vpack.c.bf16 %v391_v1, %v389_v59  ;;  %v1228_v4 = vpack.c.bf16 %v511_v2, %v509_v60 }
 0x115   :  { %1008 = vst [vmem:[%s1842_s3 + $0x54] sm:$0xff] %v1180_v3  ;;  %1056 = vst [vmem:[%s1842_s3 + $0x174] sm:$0xff] %v1228_v4  ;;  %v394_v44 = vpop.f32.mrb[16].mxu0  ;;  %v1272_v5 = vpop.f32.mrb[16].mxu1 }
 0x116   :  { %v395_v6 = vadd.f32 %v394_v44, %v1542_v46  ;;  %v556_v7 = vadd.f32 %v1272_v5, %v1617_v42  ;;  %v396_v8 = vpop.f32.mrb[17].mxu0  ;;  %v547_v9 = vpop.f32.mrb[17].mxu1 }
 0x117   :  { %v397_v10 = vadd.f32 %v396_v8, %v1545_v47  ;;  %v548_v11 = vadd.f32 %v547_v9, %v1617_v42  ;;  %v398_v12 = vpop.f32.mrb[18].mxu0  ;;  %v1273_v13 = vpop.f32.mrb[18].mxu1 }
 0x118   :  { %v1171_v14 = vpack.c.bf16 %v556_v7, %v556_v7  ;;  %v399_v15 = vadd.f32 %v398_v12, %v1542_v46  ;;  %v559_v16 = vadd.f32 %v1273_v13, %v1617_v42  ;;  %v400_v17 = vpop.f32.mrb[19].mxu0  ;;  %v550_v18 = vpop.f32.mrb[19].mxu1 }
 0x119   :  { %v1182_v19 = vpack.c.bf16 %v397_v10, %v395_v6  ;;  %v1167_v20 = vpack.c.bf16 %v548_v11, %v548_v11  ;;  %v401_v21 = vadd.f32 %v400_v17, %v1545_v47  ;;  %v551_v22 = vadd.f32 %v550_v18, %v1617_v42 }
 0x11a   :  { %999 = vst [vmem:[%s1842_s3 + $0x20] sm:$0xf] %v1171_v14  ;;  %v1173_v23 = vpack.c.bf16 %v559_v16, %v559_v16 }
 0x11b   :  { %1010 = vst [vmem:[%s1842_s3 + $0x60] sm:$0xff] %v1182_v19  ;;  %995 = vst [vmem:[%s1842_s3 + $0x8] sm:$0xf] %v1167_v20  ;;  %v1184_v24 = vpack.c.bf16 %v401_v21, %v399_v15  ;;  %v1169_v25 = vpack.c.bf16 %v551_v22, %v551_v22 }
 0x11c   :  { %1001 = vst [vmem:[%s1842_s3 + $0x2c] sm:$0xf] %v1173_v23 }
 0x11d   :  { %1012 = vst [vmem:[%s1842_s3 + $0x6c] sm:$0xff] %v1184_v24  ;;  %997 = vst [vmem:[%s1842_s3 + $0x14] sm:$0xf] %v1169_v25  ;;  %v404_v26 = vpop.f32.mrb[20].mxu0  ;;  %v1276_v27 = vpop.f32.mrb[20].mxu1 }
 0x11e   :  { %v405_v28 = vadd.f32 %v404_v26, %v1542_v46  ;;  %v572_v29 = vadd.f32 %v1276_v27, %v1617_v42  ;;  %v406_v30 = vpop.f32.mrb[21].mxu0  ;;  %v563_v31 = vpop.f32.mrb[21].mxu1 }
 0x11f   :  { %v407_v32 = vadd.f32 %v406_v30, %v1545_v47  ;;  %v564_v33 = vadd.f32 %v563_v31, %v1617_v42  ;;  %v408_v34 = vpop.f32.mrb[22].mxu0  ;;  %v1277_v35 = vpop.f32.mrb[22].mxu1 }
 0x120   :  { %v1179_v36 = vpack.c.bf16 %v572_v29, %v572_v29  ;;  %v409_v37 = vadd.f32 %v408_v34, %v1542_v46  ;;  %v575_v38 = vadd.f32 %v1277_v35, %v1617_v42  ;;  %v410_v39 = vpop.f32.mrb[23].mxu0  ;;  %v566_v40 = vpop.f32.mrb[23].mxu1 }
 0x121   :  { %v1186_v41 = vpack.c.bf16 %v407_v32, %v405_v28  ;;  %v1175_v43 = vpack.c.bf16 %v564_v33, %v564_v33  ;;  %v411_v45 = vadd.f32 %v410_v39, %v1545_v47  ;;  %v567_v48 = vadd.f32 %v566_v40, %v1617_v42 }
 0x122   :  { %1007 = vst [vmem:[%s1842_s3 + $0x50] sm:$0xf] %v1179_v36  ;;  %v1181_v49 = vpack.c.bf16 %v575_v38, %v575_v38 }
 0x123   :  { %1014 = vst [vmem:[%s1842_s3 + $0x78] sm:$0xff] %v1186_v41  ;;  %1003 = vst [vmem:[%s1842_s3 + $0x38] sm:$0xf] %v1175_v43  ;;  %v1188_v50 = vpack.c.bf16 %v411_v45, %v409_v37  ;;  %v1177_v51 = vpack.c.bf16 %v567_v48, %v567_v48 }
 0x124   :  { %1009 = vst [vmem:[%s1842_s3 + $0x5c] sm:$0xf] %v1181_v49 }
 0x125   :  { %1016 = vst [vmem:[%s1842_s3 + $0x84] sm:$0xff] %v1188_v50  ;;  %1005 = vst [vmem:[%s1842_s3 + $0x44] sm:$0xf] %v1177_v51  ;;  %v414_v52 = vpop.f32.mrb[24].mxu0  ;;  %v1280_v53 = vpop.f32.mrb[24].mxu1 }
 0x126   :  { %v415_v54 = vadd.f32 %v414_v52, %v1542_v46  ;;  %v588_v55 = vadd.f32 %v1280_v53, %v1617_v42  ;;  %v416_v56 = vpop.f32.mrb[25].mxu0  ;;  %v579_v57 = vpop.f32.mrb[25].mxu1 }
 0x127   :  { %v417_v58 = vadd.f32 %v416_v56, %v1545_v47  ;;  %v580_v59 = vadd.f32 %v579_v57, %v1617_v42  ;;  %v418_v60 = vpop.f32.mrb[26].mxu0  ;;  %v1281_v61 = vpop.f32.mrb[26].mxu1 }
 0x128   :  { %v1187_v62 = vpack.c.bf16 %v588_v55, %v588_v55  ;;  %v419_v63 = vadd.f32 %v418_v60, %v1542_v46  ;;  %v591_v0 = vadd.f32 %v1281_v61, %v1617_v42  ;;  %v420_v1 = vpop.f32.mrb[27].mxu0  ;;  %v582_v2 = vpop.f32.mrb[27].mxu1 }
 0x129   :  { %v1190_v3 = vpack.c.bf16 %v417_v58, %v415_v54  ;;  %v1183_v4 = vpack.c.bf16 %v580_v59, %v580_v59  ;;  %v421_v44 = vadd.f32 %v420_v1, %v1545_v47  ;;  %v583_v5 = vadd.f32 %v582_v2, %v1617_v42 }
 0x12a   :  { %1015 = vst [vmem:[%s1842_s3 + $0x80] sm:$0xf] %v1187_v62  ;;  %v1189_v6 = vpack.c.bf16 %v591_v0, %v591_v0 }
 0x12b   :  { %1018 = vst [vmem:[%s1842_s3 + $0x90] sm:$0xff] %v1190_v3  ;;  %1011 = vst [vmem:[%s1842_s3 + $0x68] sm:$0xf] %v1183_v4  ;;  %v1192_v7 = vpack.c.bf16 %v421_v44, %v419_v63  ;;  %v1185_v8 = vpack.c.bf16 %v583_v5, %v583_v5 }
 0x12c   :  { %1017 = vst [vmem:[%s1842_s3 + $0x8c] sm:$0xf] %v1189_v6 }
 0x12d   :  { %1020 = vst [vmem:[%s1842_s3 + $0x9c] sm:$0xff] %v1192_v7  ;;  %1013 = vst [vmem:[%s1842_s3 + $0x74] sm:$0xf] %v1185_v8  ;;  %v424_v9 = vpop.f32.mrb[28].mxu0  ;;  %v1284_v10 = vpop.f32.mrb[28].mxu1 }
 0x12e   :  { %v425_v11 = vadd.f32 %v424_v9, %v1542_v46  ;;  %v604_v12 = vadd.f32 %v1284_v10, %v1617_v42  ;;  %v426_v13 = vpop.f32.mrb[29].mxu0  ;;  %v595_v14 = vpop.f32.mrb[29].mxu1 }
 0x12f   :  { %v427_v15 = vadd.f32 %v426_v13, %v1545_v47  ;;  %v596_v16 = vadd.f32 %v595_v14, %v1617_v42  ;;  %v428_v17 = vpop.f32.mrb[30].mxu0  ;;  %v1285_v18 = vpop.f32.mrb[30].mxu1 }
 0x130   :  { %v1195_v19 = vpack.c.bf16 %v604_v12, %v604_v12  ;;  %v429_v20 = vadd.f32 %v428_v17, %v1542_v46  ;;  %v607_v21 = vadd.f32 %v1285_v18, %v1617_v42  ;;  %v430_v22 = vpop.f32.mrb[31].mxu0  ;;  %v598_v23 = vpop.f32.mrb[31].mxu1 }
 0x131   :  { %v1194_v24 = vpack.c.bf16 %v427_v15, %v425_v11  ;;  %v1191_v25 = vpack.c.bf16 %v596_v16, %v596_v16  ;;  %v431_v26 = vadd.f32 %v430_v22, %v1545_v47  ;;  %v599_v27 = vadd.f32 %v598_v23, %v1617_v42 }
 0x132   :  { %1023 = vst [vmem:[%s1842_s3 + $0xb0] sm:$0xf] %v1195_v19  ;;  %v1197_v28 = vpack.c.bf16 %v607_v21, %v607_v21 }
 0x133   :  { %1022 = vst [vmem:[%s1842_s3 + $0xa8] sm:$0xff] %v1194_v24  ;;  %1019 = vst [vmem:[%s1842_s3 + $0x98] sm:$0xf] %v1191_v25  ;;  %v1196_v29 = vpack.c.bf16 %v431_v26, %v429_v20  ;;  %v1193_v30 = vpack.c.bf16 %v599_v27, %v599_v27 }
 0x134   :  { %1025 = vst [vmem:[%s1842_s3 + $0xbc] sm:$0xf] %v1197_v28 }
 0x135   :  { %1024 = vst [vmem:[%s1842_s3 + $0xb4] sm:$0xff] %v1196_v29  ;;  %1021 = vst [vmem:[%s1842_s3 + $0xa4] sm:$0xf] %v1193_v30  ;;  %v434_v31 = vpop.f32.mrb[32].mxu0  ;;  %v1288_v32 = vpop.f32.mrb[32].mxu1 }
 0x136   :  { %v435_v33 = vadd.f32 %v434_v31, %v1542_v46  ;;  %v620_v34 = vadd.f32 %v1288_v32, %v1617_v42  ;;  %v436_v35 = vpop.f32.mrb[33].mxu0  ;;  %v611_v36 = vpop.f32.mrb[33].mxu1 }
 0x137   :  { %v437_v37 = vadd.f32 %v436_v35, %v1545_v47  ;;  %v612_v38 = vadd.f32 %v611_v36, %v1617_v42  ;;  %v438_v39 = vpop.f32.mrb[34].mxu0  ;;  %v1289_v40 = vpop.f32.mrb[34].mxu1 }
 0x138   :  { %v1203_v41 = vpack.c.bf16 %v620_v34, %v620_v34  ;;  %v439_v43 = vadd.f32 %v438_v39, %v1542_v46  ;;  %v623_v45 = vadd.f32 %v1289_v40, %v1617_v42  ;;  %v440_v48 = vpop.f32.mrb[35].mxu0  ;;  %v614_v49 = vpop.f32.mrb[35].mxu1 }
 0x139   :  { %v1198_v50 = vpack.c.bf16 %v437_v37, %v435_v33  ;;  %v1199_v51 = vpack.c.bf16 %v612_v38, %v612_v38  ;;  %v441_v52 = vadd.f32 %v440_v48, %v1545_v47  ;;  %v615_v53 = vadd.f32 %v614_v49, %v1617_v42 }
 0x13a   :  { %1031 = vst [vmem:[%s1842_s3 + $0xe0] sm:$0xf] %v1203_v41  ;;  %v1205_v54 = vpack.c.bf16 %v623_v45, %v623_v45 }
 0x13b   :  { %1026 = vst [vmem:[%s1842_s3 + $0xc0] sm:$0xff] %v1198_v50  ;;  %1027 = vst [vmem:[%s1842_s3 + $0xc8] sm:$0xf] %v1199_v51  ;;  %v1200_v55 = vpack.c.bf16 %v441_v52, %v439_v43  ;;  %v1201_v56 = vpack.c.bf16 %v615_v53, %v615_v53 }
 0x13c   :  { %1033 = vst [vmem:[%s1842_s3 + $0xec] sm:$0xf] %v1205_v54 }
 0x13d   :  { %1028 = vst [vmem:[%s1842_s3 + $0xcc] sm:$0xff] %v1200_v55  ;;  %1029 = vst [vmem:[%s1842_s3 + $0xd4] sm:$0xf] %v1201_v56  ;;  %v444_v57 = vpop.f32.mrb[36].mxu0  ;;  %v1292_v58 = vpop.f32.mrb[36].mxu1 }
 0x13e   :  { %v445_v59 = vadd.f32 %v444_v57, %v1542_v46  ;;  %v636_v60 = vadd.f32 %v1292_v58, %v1617_v42  ;;  %v446_v61 = vpop.f32.mrb[37].mxu0  ;;  %v627_v62 = vpop.f32.mrb[37].mxu1 }
 0x13f   :  { %v447_v63 = vadd.f32 %v446_v61, %v1545_v47  ;;  %v628_v0 = vadd.f32 %v627_v62, %v1617_v42  ;;  %v448_v1 = vpop.f32.mrb[38].mxu0  ;;  %v1293_v2 = vpop.f32.mrb[38].mxu1 }
 0x140   :  { %v1211_v3 = vpack.c.bf16 %v636_v60, %v636_v60  ;;  %v449_v4 = vadd.f32 %v448_v1, %v1542_v46  ;;  %v639_v44 = vadd.f32 %v1293_v2, %v1617_v42  ;;  %v450_v5 = vpop.f32.mrb[39].mxu0  ;;  %v630_v6 = vpop.f32.mrb[39].mxu1 }
 0x141   :  { %v1202_v7 = vpack.c.bf16 %v447_v63, %v445_v59  ;;  %v1207_v8 = vpack.c.bf16 %v628_v0, %v628_v0  ;;  %v451_v9 = vadd.f32 %v450_v5, %v1545_v47  ;;  %v631_v10 = vadd.f32 %v630_v6, %v1617_v42 }
 0x142   :  { %1039 = vst [vmem:[%s1842_s3 + $0x110] sm:$0xf] %v1211_v3  ;;  %v1213_v11 = vpack.c.bf16 %v639_v44, %v639_v44 }
 0x143   :  { %1030 = vst [vmem:[%s1842_s3 + $0xd8] sm:$0xff] %v1202_v7  ;;  %1035 = vst [vmem:[%s1842_s3 + $0xf8] sm:$0xf] %v1207_v8  ;;  %v1204_v12 = vpack.c.bf16 %v451_v9, %v449_v4  ;;  %v1209_v13 = vpack.c.bf16 %v631_v10, %v631_v10 }
 0x144   :  { %1041 = vst [vmem:[%s1842_s3 + $0x11c] sm:$0xf] %v1213_v11 }
 0x145   :  { %1032 = vst [vmem:[%s1842_s3 + $0xe4] sm:$0xff] %v1204_v12  ;;  %1037 = vst [vmem:[%s1842_s3 + $0x104] sm:$0xf] %v1209_v13  ;;  %v454_v14 = vpop.f32.mrb[40].mxu0  ;;  %v1296_v15 = vpop.f32.mrb[40].mxu1 }
 0x146   :  { %v455_v16 = vadd.f32 %v454_v14, %v1542_v46  ;;  %v652_v17 = vadd.f32 %v1296_v15, %v1617_v42  ;;  %v456_v18 = vpop.f32.mrb[41].mxu0  ;;  %v643_v19 = vpop.f32.mrb[41].mxu1 }
 0x147   :  { %v457_v20 = vadd.f32 %v456_v18, %v1545_v47  ;;  %v644_v21 = vadd.f32 %v643_v19, %v1617_v42  ;;  %v458_v22 = vpop.f32.mrb[42].mxu0  ;;  %v1297_v23 = vpop.f32.mrb[42].mxu1 }
 0x148   :  { %v1219_v24 = vpack.c.bf16 %v652_v17, %v652_v17  ;;  %v459_v25 = vadd.f32 %v458_v22, %v1542_v46  ;;  %v655_v26 = vadd.f32 %v1297_v23, %v1617_v42  ;;  %v460_v27 = vpop.f32.mrb[43].mxu0  ;;  %v646_v28 = vpop.f32.mrb[43].mxu1 }
 0x149   :  { %v1206_v29 = vpack.c.bf16 %v457_v20, %v455_v16  ;;  %v1215_v30 = vpack.c.bf16 %v644_v21, %v644_v21  ;;  %v461_v31 = vadd.f32 %v460_v27, %v1545_v47  ;;  %v647_v32 = vadd.f32 %v646_v28, %v1617_v42 }
 0x14a   :  { %1047 = vst [vmem:[%s1842_s3 + $0x140] sm:$0xf] %v1219_v24  ;;  %v1221_v33 = vpack.c.bf16 %v655_v26, %v655_v26 }
 0x14b   :  { %1034 = vst [vmem:[%s1842_s3 + $0xf0] sm:$0xff] %v1206_v29  ;;  %1043 = vst [vmem:[%s1842_s3 + $0x128] sm:$0xf] %v1215_v30  ;;  %v1208_v34 = vpack.c.bf16 %v461_v31, %v459_v25  ;;  %v1217_v35 = vpack.c.bf16 %v647_v32, %v647_v32 }
 0x14c   :  { %1049 = vst [vmem:[%s1842_s3 + $0x14c] sm:$0xf] %v1221_v33 }
 0x14d   :  { %1036 = vst [vmem:[%s1842_s3 + $0xfc] sm:$0xff] %v1208_v34  ;;  %1045 = vst [vmem:[%s1842_s3 + $0x134] sm:$0xf] %v1217_v35  ;;  %v464_v36 = vpop.f32.mrb[44].mxu0  ;;  %v1300_v37 = vpop.f32.mrb[44].mxu1 }
 0x14e   :  { %v465_v38 = vadd.f32 %v464_v36, %v1542_v46  ;;  %v668_v39 = vadd.f32 %v1300_v37, %v1617_v42  ;;  %v466_v40 = vpop.f32.mrb[45].mxu0  ;;  %v659_v41 = vpop.f32.mrb[45].mxu1 }
 0x14f   :  { %v467_v43 = vadd.f32 %v466_v40, %v1545_v47  ;;  %v660_v45 = vadd.f32 %v659_v41, %v1617_v42  ;;  %v468_v48 = vpop.f32.mrb[46].mxu0  ;;  %v1301_v49 = vpop.f32.mrb[46].mxu1 }
 0x150   :  { %v1227_v50 = vpack.c.bf16 %v668_v39, %v668_v39  ;;  %v469_v51 = vadd.f32 %v468_v48, %v1542_v46  ;;  %v671_v52 = vadd.f32 %v1301_v49, %v1617_v42  ;;  %v470_v53 = vpop.f32.mrb[47].mxu0  ;;  %v662_v54 = vpop.f32.mrb[47].mxu1 }
 0x151   :  { %v1210_v55 = vpack.c.bf16 %v467_v43, %v465_v38  ;;  %v1223_v56 = vpack.c.bf16 %v660_v45, %v660_v45  ;;  %v471_v57 = vadd.f32 %v470_v53, %v1545_v47  ;;  %v663_v58 = vadd.f32 %v662_v54, %v1617_v42 }
 0x152   :  { %1055 = vst [vmem:[%s1842_s3 + $0x170] sm:$0xf] %v1227_v50  ;;  %v1229_v59 = vpack.c.bf16 %v671_v52, %v671_v52 }
 0x153   :  { %1038 = vst [vmem:[%s1842_s3 + $0x108] sm:$0xff] %v1210_v55  ;;  %1051 = vst [vmem:[%s1842_s3 + $0x158] sm:$0xf] %v1223_v56  ;;  %v1212_v46 = vpack.c.bf16 %v471_v57, %v469_v51  ;;  %v1225_v60 = vpack.c.bf16 %v663_v58, %v663_v58 }
 0x154   :  { %1057 = vst [vmem:[%s1842_s3 + $0x17c] sm:$0xf] %v1229_v59 }
 0x155   :  { %1040 = vst [vmem:[%s1842_s3 + $0x114] sm:$0xff] %v1212_v46  ;;  %1053 = vst [vmem:[%s1842_s3 + $0x164] sm:$0xf] %v1225_v60 }

// kernel: relu_self_attention.3
= control target key start
LH: loop header
LB: loop body
LE: loop exit
PB: predicated region body
PF: predicated region fallthrough
CT: control target
= control target key end

     0   :  { %s3700_s12 = smov 0   ;;  %s3702_s13 = smov 0   ;;  %s4420_s0 = inlined_call_operand.vmem [shape: bf16[3,2,4,128,32], index: 0, kind: input, shape index: {}, may-alias: {0,1,2}]   ;;  %s4421_s1 = inlined_call_operand.vmem [shape: bf16[3,2,4,128,32], index: 1, kind: input, shape index: {}, may-alias: {0,1,2}]   ;;  %s4422_s2 = inlined_call_operand.vmem [shape: bf16[3,2,4,128,32], index: 2, kind: input, shape index: {}, may-alias: {0,1,2}]   ;;  %s4423_s3 = inlined_call_operand.vmem [shape: f32[2,4,128,32], index: 3, kind: output, shape index: {}]  }
   0x1   :  { %s3704_s14 = smov 0  }
   0x2 LB: > { %s32_s15 = sadd.s32 1, %s3673_s13  ;;  %p2751_p0 = scmp.ge.s32.totalorder %s3677_s14, 1  ;;  %s3677_s14 = sphi %s3704_s14, %s13_s14   ;;  %s3673_s13 = sphi %s3702_s13, %s4441_s13   ;;  %s3669_s12 = sphi %s3700_s12, %s4440_s12  }
   0x3   : > { %p34_p1 = scmp.ge.s32.totalorder %s32_s15, 2  ;;  %p201_p2 = scmp.lt.s32.totalorder %s3677_s14, 3 }
   0x5   : > { %s4443_s15 = smov (%p34_p1, %s32_s15), 0  ;;  %p202_p3 = pnand %p2751_p0, %p201_p2 }
   0x6   : > { %p254_p4 = scmp.lt.s32.totalorder (!%p202_p3), %s3669_s12, 1  ;;  %vm300_vm0 = vcmask (!%p202_p3), 261120  }
   0x7   : > { %205 = sbr.rel (%p202_p3) target bundleno = 620 (0x26c), region = 32 }
   0xe   : > { %s4445_s12 = smov (!%p254_p4, %s3669_s12), 1 }
   0xf   : > { %s3721_s16 = sshll.u32 %s4445_s12, 8  ;;  %s3117_s26 = sshll.u32 %s4445_s12, 9 }
  0x10   : > { %s3727_s19 = scalar_lea.vmem %s4421_s1, %s3721_s16  ;;  %s3749_s22 = scalar_lea.vmem %s4420_s0, %s3721_s16 }
  0x11   : > { %v3559_v0 = vld [vmem:[%s3727_s19 + $0x200] sm:$0xff]   ;;  %v3561_v3 = vld [vmem:[%s3727_s19 + $0x208] sm:$0xff]   ;;  %v3563_v7 = vld [vmem:[%s3727_s19 + $0x210] sm:$0xff]   ;;  %s3798_s25 = scalar_lea.vmem %s4422_s2, %s3721_s16  ;;  %s4225_s29 = scalar_lea.vmem %s4423_s3, %s3117_s26 }
  0x12   : > { %v3560_v1 = vld [vmem:[%s3727_s19 + $0x240] sm:$0xff]   ;;  %3502 = vmatprep.subr.msk.bf16.mxu0 %vm300_vm0, %v3559_v0  ;;  %v670_v2 = vsel %vm300_vm0, %v3559_v0, 0  ;;  %v3562_v5 = vld [vmem:[%s3727_s19 + $0x248] sm:$0xff]   ;;  %v673_v6 = vsel %vm300_vm0, %v3561_v3, 0  ;;  %v3564_v9 = vld [vmem:[%s3727_s19 + $0x250] sm:$0xff]   ;;  %v676_v12 = vsel %vm300_vm0, %v3563_v7, 0 }
  0x13   : > { %3510 = vmatprep.subr.msk.bf16.mxu1 %vm300_vm0, %v3560_v1  ;;  %3247 = vmatpush3.bf16.xpose.msra.mxu0 %v670_v2  ;;  %v895_v4 = vsel %vm300_vm0, %v3560_v1, 0  ;;  %v898_v8 = vsel %vm300_vm0, %v3562_v5, 0  ;;  %v3565_v10 = vld [vmem:[%s3727_s19 + $0x218] sm:$0xff]   ;;  %v3575_v13 = vld [vmem:[%s3749_s22] sm:$0xff]   ;;  %v901_v14 = vsel %vm300_vm0, %v3564_v9, 0  ;;  %v3569_v21 = vld [vmem:[%s3727_s19 + $0x228] sm:$0xff]  }
  0x14   : > { %3279 = vmatpush3.bf16.xpose.msra.mxu1 %v895_v4  ;;  %3503 = vmatprep.subr.msk.bf16.mxu0 %vm300_vm0, %v3561_v3  ;;  %v3566_v11 = vld [vmem:[%s3727_s19 + $0x258] sm:$0xff]   ;;  %v3576_v15 = vld [vmem:[%s3749_s22 + $0x40] sm:$0xff]   ;;  %v679_v16 = vsel %vm300_vm0, %v3565_v10, 0  ;;  %v3570_v23 = vld [vmem:[%s3727_s19 + $0x268] sm:$0xff]   ;;  %v685_v24 = vsel %vm300_vm0, %v3569_v21, 0 }
  0x15   : > { %3511 = vmatprep.subr.msk.bf16.mxu1 %vm300_vm0, %v3562_v5  ;;  %3262 = vmatprep.mubr.msk.bf16.mxu0 %vm300_vm0, %v3575_v13  ;;  %v3567_v17 = vld [vmem:[%s3727_s19 + $0x220] sm:$0xff]   ;;  %v904_v18 = vsel %vm300_vm0, %v3566_v11, 0  ;;  %v3571_v25 = vld [vmem:[%s3727_s19 + $0x230] sm:$0xff]   ;;  %v910_v26 = vsel %vm300_vm0, %v3570_v23, 0  ;;  %v3573_v29 = vld [vmem:[%s3727_s19 + $0x238] sm:$0xff]  }
  0x16   : > { %3294 = vmatprep.mubr.msk.bf16.mxu1 %vm300_vm0, %v3576_v15  ;;  %v3568_v19 = vld [vmem:[%s3727_s19 + $0x260] sm:$0xff]   ;;  %v682_v20 = vsel %vm300_vm0, %v3567_v17, 0  ;;  %v3572_v27 = vld [vmem:[%s3727_s19 + $0x270] sm:$0xff]   ;;  %v688_v28 = vsel %vm300_vm0, %v3571_v25, 0  ;;  %v3574_v31 = vld [vmem:[%s3727_s19 + $0x278] sm:$0xff]   ;;  %v691_v32 = vsel %vm300_vm0, %v3573_v29, 0 }
  0x17   : > { %v907_v22 = vsel %vm300_vm0, %v3568_v19, 0  ;;  %v913_v30 = vsel %vm300_vm0, %v3572_v27, 0  ;;  %v3579_v33 = vld [vmem:[%s3727_s19 + $0x280] sm:$0xff]   ;;  %v916_v34 = vsel %vm300_vm0, %v3574_v31, 0  ;;  %v3577_v36 = vld [vmem:[%s3749_s22 + $0x8] sm:$0xff]   ;;  %v3587_v42 = vld [vmem:[%s3749_s22 + $0x10] sm:$0xff]  }
  0x18   : > { %v3580_v35 = vld [vmem:[%s3727_s19 + $0x2c0] sm:$0xff]   ;;  %v3578_v37 = vld [vmem:[%s3749_s22 + $0x48] sm:$0xff]   ;;  %v1120_v39 = vsel %vm300_vm0, %v3579_v33, 0  ;;  %v3588_v43 = vld [vmem:[%s3749_s22 + $0x50] sm:$0xff]  }
  0x19   : > { %v3581_v38 = vld [vmem:[%s3727_s19 + $0x288] sm:$0xff]   ;;  %v1345_v41 = vsel %vm300_vm0, %v3580_v35, 0  ;;  %v3583_v44 = vld [vmem:[%s3727_s19 + $0x290] sm:$0xff]   ;;  %v3585_v46 = vld [vmem:[%s3727_s19 + $0x298] sm:$0xff]  }
  0x1a   : > { %v3582_v40 = vld [vmem:[%s3727_s19 + $0x2c8] sm:$0xff]   ;;  %v3584_v45 = vld [vmem:[%s3727_s19 + $0x2d0] sm:$0xff]   ;;  %v3591_v47 = vld [vmem:[%s3749_s22 + $0x18] sm:$0xff]   ;;  %v1123_v49 = vsel %vm300_vm0, %v3581_v38, 0  ;;  %v1126_v52 = vsel %vm300_vm0, %v3583_v44, 0  ;;  %v1129_v55 = vsel %vm300_vm0, %v3585_v46, 0 }
  0x1b   : > { %3249 = vmatpush3.bf16.xpose.msra.mxu0 %v673_v6  ;;  %v3592_v48 = vld [vmem:[%s3749_s22 + $0x58] sm:$0xff]   ;;  %v1348_v50 = vsel %vm300_vm0, %v3582_v40, 0  ;;  %v3593_v51 = vld [vmem:[%s3749_s22 + $0x20] sm:$0xff]   ;;  %v1351_v54 = vsel %vm300_vm0, %v3584_v45, 0  ;;  %v3597_v56 = vld [vmem:[%s3749_s22 + $0x28] sm:$0xff]  }
  0x1c   : > { %3281 = vmatpush3.bf16.xpose.msra.mxu1 %v898_v8  ;;  %3504 = vmatprep.subr.msk.bf16.mxu0 %vm300_vm0, %v3563_v7  ;;  %v3594_v53 = vld [vmem:[%s3749_s22 + $0x60] sm:$0xff]   ;;  %v3598_v57 = vld [vmem:[%s3749_s22 + $0x68] sm:$0xff]   ;;  %v3586_v58 = vld [vmem:[%s3727_s19 + $0x2d8] sm:$0xff]  }
  0x1d   : > { %3512 = vmatprep.subr.msk.bf16.mxu1 %vm300_vm0, %v3564_v9  ;;  %v3599_v59 = vld [vmem:[%s3749_s22 + $0x30] sm:$0xff]   ;;  %v3603_v61 = vld [vmem:[%s3749_s22 + $0x38] sm:$0xff]   ;;  %v3589_v63 = vld [vmem:[%s3727_s19 + $0x2a0] sm:$0xff]   ;;  %v1354_v0 = vsel %vm300_vm0, %v3586_v58, 0 }
  0x1e   : > { %v3600_v60 = vld [vmem:[%s3749_s22 + $0x70] sm:$0xff]   ;;  %v3604_v62 = vld [vmem:[%s3749_s22 + $0x78] sm:$0xff]   ;;  %v3590_v1 = vld [vmem:[%s3727_s19 + $0x2e0] sm:$0xff]   ;;  %v1132_v4 = vsel %vm300_vm0, %v3589_v63, 0 }
  0x1f   : > { %v3607_v2 = vld [vmem:[%s3749_s22 + $0x80] sm:$0xff]   ;;  %v3595_v5 = vld [vmem:[%s3727_s19 + $0x2a8] sm:$0xff]   ;;  %v1357_v6 = vsel %vm300_vm0, %v3590_v1, 0  ;;  %v3601_v9 = vld [vmem:[%s3727_s19 + $0x2b0] sm:$0xff]  }
  0x20   : > { %v3608_v3 = vld [vmem:[%s3749_s22 + $0xc0] sm:$0xff]   ;;  %v3596_v7 = vld [vmem:[%s3727_s19 + $0x2e8] sm:$0xff]   ;;  %v1135_v8 = vsel %vm300_vm0, %v3595_v5, 0  ;;  %v3605_v13 = vld [vmem:[%s3727_s19 + $0x2b8] sm:$0xff]  }
  0x21   : > { %v3606_v15 = vld [vmem:[%s3727_s19 + $0x2f8] sm:$0xff]  }
  0x23   : > { %3251 = vmatpush3.bf16.xpose.msra.mxu0 %v676_v12  ;;  %v1138_v12 = vsel %vm300_vm0, %v3601_v9, 0 }
  0x24   : > { %3283 = vmatpush3.bf16.xpose.msra.mxu1 %v901_v14  ;;  %3505 = vmatprep.subr.msk.bf16.mxu0 %vm300_vm0, %v3565_v10  ;;  %v1360_v10 = vsel %vm300_vm0, %v3596_v7, 0 }
  0x25   : > { %3513 = vmatprep.subr.msk.bf16.mxu1 %vm300_vm0, %v3566_v11  ;;  %v3602_v11 = vld [vmem:[%s3727_s19 + $0x2f0] sm:$0xff]  }
  0x26   : > { %v1363_v14 = vsel %vm300_vm0, %v3602_v11, 0 }
  0x2b   : > { %3253 = vmatpush3.bf16.xpose.msra.mxu0 %v679_v16  ;;  %v1141_v16 = vsel %vm300_vm0, %v3605_v13, 0 }
  0x2c   : > { %3285 = vmatpush3.bf16.xpose.msra.mxu1 %v904_v18  ;;  %3506 = vmatprep.subr.msk.bf16.mxu0 %vm300_vm0, %v3567_v17  ;;  %v3623_v17 = vld [vmem:[%s3798_s25 + $0x400] sm:$0xff]   ;;  %v1366_v18 = vsel %vm300_vm0, %v3606_v15, 0 }
  0x2d   : > { %3514 = vmatprep.subr.msk.bf16.mxu1 %vm300_vm0, %v3568_v19  ;;  %v3624_v19 = vld [vmem:[%s3798_s25 + $0x440] sm:$0xff]  }
  0x33   : > { %3255 = vmatpush3.bf16.xpose.msra.mxu0 %v682_v20  ;;  %v3609_v20 = vld [vmem:[%s3749_s22 + $0x88] sm:$0xff]  }
  0x34   : > { %3287 = vmatpush3.bf16.xpose.msra.mxu1 %v907_v22  ;;  %3507 = vmatprep.subr.msk.bf16.mxu0 %vm300_vm0, %v3569_v21  ;;  %v3610_v21 = vld [vmem:[%s3749_s22 + $0xc8] sm:$0xff]   ;;  %v3611_v22 = vld [vmem:[%s3749_s22 + $0x90] sm:$0xff]  }
  0x35   : > { %3515 = vmatprep.subr.msk.bf16.mxu1 %vm300_vm0, %v3570_v23  ;;  %v3612_v23 = vld [vmem:[%s3749_s22 + $0xd0] sm:$0xff]  }
  0x3b   : > { %3257 = vmatpush3.bf16.xpose.msra.mxu0 %v685_v24  ;;  %v3625_v24 = vld [vmem:[%s3798_s25 + $0x408] sm:$0xff]  }
  0x3c   : > { %3289 = vmatpush3.bf16.xpose.msra.mxu1 %v910_v26  ;;  %3508 = vmatprep.subr.msk.bf16.mxu0 %vm300_vm0, %v3571_v25  ;;  %v3626_v25 = vld [vmem:[%s3798_s25 + $0x448] sm:$0xff]   ;;  %v3627_v26 = vld [vmem:[%s3798_s25 + $0x410] sm:$0xff]  }
  0x3d   : > { %3516 = vmatprep.subr.msk.bf16.mxu1 %vm300_vm0, %v3572_v27  ;;  %v3613_v27 = vld [vmem:[%s3749_s22 + $0x98] sm:$0xff]  }
  0x43   : > { %3259 = vmatpush3.bf16.xpose.msra.mxu0 %v688_v28  ;;  %v3628_v28 = vld [vmem:[%s3798_s25 + $0x450] sm:$0xff]  }
  0x44   : > { %3291 = vmatpush3.bf16.xpose.msra.mxu1 %v913_v30  ;;  %3509 = vmatprep.subr.msk.bf16.mxu0 %vm300_vm0, %v3573_v29  ;;  %v3614_v29 = vld [vmem:[%s3749_s22 + $0xd8] sm:$0xff]   ;;  %v3615_v30 = vld [vmem:[%s3749_s22 + $0xa0] sm:$0xff]  }
  0x45   : > { %3517 = vmatprep.subr.msk.bf16.mxu1 %vm300_vm0, %v3574_v31  ;;  %v3616_v31 = vld [vmem:[%s3749_s22 + $0xe0] sm:$0xff]  }
  0x4b   : > { %3261 = vmatpush3.bf16.xpose.msra.mxu0 %v691_v32  ;;  %v3629_v32 = vld [vmem:[%s3798_s25 + $0x418] sm:$0xff]  }
  0x4c   : > { %3293 = vmatpush3.bf16.xpose.msra.mxu1 %v916_v34  ;;  %3518 = vmatprep.subr.msk.bf16.mxu0 %vm300_vm0, %v3579_v33  ;;  %v3630_v33 = vld [vmem:[%s3798_s25 + $0x458] sm:$0xff]   ;;  %v3631_v34 = vld [vmem:[%s3798_s25 + $0x420] sm:$0xff]  }
  0x4d   : > { %3526 = vmatprep.subr.msk.bf16.mxu1 %vm300_vm0, %v3580_v35  ;;  %v3617_v35 = vld [vmem:[%s3749_s22 + $0xa8] sm:$0xff]  }
  0x52   : > { %3263 = vmatmul.mubr.msk.bf16.vlgmr.msra.gmra.mrb[0].mxu0 %vm300_vm0, %v3577_v36  ;;  %v3632_v36 = vld [vmem:[%s3798_s25 + $0x460] sm:$0xff]  }
  0x53   : > { %3295 = vmatmul.mubr.msk.bf16.vlgmr.msra.gmra.mrb[0].mxu1 %vm300_vm0, %v3578_v37  ;;  %3311 = vmatpush3.bf16.xpose.msra.mxu0 %v1120_v39  ;;  %v3618_v37 = vld [vmem:[%s3749_s22 + $0xe8] sm:$0xff]   ;;  %v3620_v39 = vld [vmem:[%s3749_s22 + $0xf0] sm:$0xff]  }
  0x54   : > { %3343 = vmatpush3.bf16.xpose.msra.mxu1 %v1345_v41  ;;  %3519 = vmatprep.subr.msk.bf16.mxu0 %vm300_vm0, %v3581_v38  ;;  %v3619_v38 = vld [vmem:[%s3749_s22 + $0xb0] sm:$0xff]   ;;  %v3634_v41 = vld [vmem:[%s3798_s25 + $0x468] sm:$0xff]  }
  0x55   : > { %3527 = vmatprep.subr.msk.bf16.mxu1 %vm300_vm0, %v3582_v40  ;;  %3266 = vmatprep.mubr.msk.bf16.mxu0 %vm300_vm0, %v3587_v42  ;;  %v3633_v40 = vld [vmem:[%s3798_s25 + $0x428] sm:$0xff]   ;;  %v3635_v42 = vld [vmem:[%s3798_s25 + $0x430] sm:$0xff]  }
  0x56   : > { %3298 = vmatprep.mubr.msk.bf16.mxu1 %vm300_vm0, %v3588_v43  ;;  %v3621_v43 = vld [vmem:[%s3749_s22 + $0xb8] sm:$0xff]  }
  0x5a   : > { %3267 = vmatmul.mubr.msk.bf16.gmra.mrb[4].mxu0 %vm300_vm0, %v3591_v47  ;;  %v3638_v47 = vld [vmem:[%s3798_s25 + $0x478] sm:$0xff]  }
  0x5b   : > { %3313 = vmatpush3.bf16.xpose.msra.mxu0 %v1123_v49  ;;  %3299 = vmatmul.mubr.msk.bf16.gmra.mrb[4].mxu1 %vm300_vm0, %v3592_v48  ;;  %v3918_v48 = vld [vmem:[%s3798_s25 + $0x480] sm:$0xff]  }
  0x5c   : > { %3345 = vmatpush3.bf16.xpose.msra.mxu1 %v1348_v50  ;;  %3520 = vmatprep.subr.msk.bf16.mxu0 %vm300_vm0, %v3583_v44  ;;  %v3636_v44 = vld [vmem:[%s3798_s25 + $0x470] sm:$0xff]   ;;  %v3921_v49 = vld [vmem:[%s3798_s25 + $0x4c0] sm:$0xff]   ;;  %v3679_v50 = vmov 0.0  }
  0x5d   : > { %3528 = vmatprep.subr.msk.bf16.mxu1 %vm300_vm0, %v3584_v45  ;;  %3270 = vmatprep.mubr.msk.bf16.mxu0 %vm300_vm0, %v3593_v51  ;;  %v3622_v45 = vld [vmem:[%s3749_s22 + $0xf8] sm:$0xff]   ;;  %303 = vst.msk [vmem:[#allocation2 + $0x10] sm:$0xff] %vm300_vm0, %v3679_v50  ;;  %301 = vst.msk [vmem:[#allocation2] sm:$0xff] %vm300_vm0, %v3679_v50  ;;  %v1465_v51 = vlaneseq }
  0x5e   : > { %3302 = vmatprep.mubr.msk.bf16.mxu1 %vm300_vm0, %v3594_v53  ;;  %302 = vst.msk [vmem:[#allocation2 + $0x8] sm:$0xff] %vm300_vm0, %v3679_v50  ;;  %304 = vst.msk [vmem:[#allocation2 + $0x18] sm:$0xff] %vm300_vm0, %v3679_v50 }
  0x5f   : > { %305 = vst.msk [vmem:[#allocation2 + $0x20] sm:$0xff] %vm300_vm0, %v3679_v50  ;;  %306 = vst.msk [vmem:[#allocation2 + $0x28] sm:$0xff] %vm300_vm0, %v3679_v50 }
  0x60   : > { %307 = vst.msk [vmem:[#allocation2 + $0x30] sm:$0xff] %vm300_vm0, %v3679_v50  ;;  %308 = vst.msk [vmem:[#allocation2 + $0x38] sm:$0xff] %vm300_vm0, %v3679_v50 }
  0x61   : > { %309 = vst.msk [vmem:[#allocation2 + $0x40] sm:$0xff] %vm300_vm0, %v3679_v50  ;;  %310 = vst.msk [vmem:[#allocation2 + $0x48] sm:$0xff] %vm300_vm0, %v3679_v50 }
  0x62   : > { %3271 = vmatmul.mubr.msk.bf16.gmra.mrb[8].mxu0 %vm300_vm0, %v3597_v56  ;;  %311 = vst.msk [vmem:[#allocation2 + $0x50] sm:$0xff] %vm300_vm0, %v3679_v50  ;;  %312 = vst.msk [vmem:[#allocation2 + $0x58] sm:$0xff] %vm300_vm0, %v3679_v50 }
  0x63   : > { %3315 = vmatpush3.bf16.xpose.msra.mxu0 %v1126_v52  ;;  %3303 = vmatmul.mubr.msk.bf16.gmra.mrb[8].mxu1 %vm300_vm0, %v3598_v57  ;;  %313 = vst.msk [vmem:[#allocation2 + $0x60] sm:$0xff] %vm300_vm0, %v3679_v50  ;;  %314 = vst.msk [vmem:[#allocation2 + $0x68] sm:$0xff] %vm300_vm0, %v3679_v50  ;;  %v4053_v52 = vshrl.u32 %v1465_v51, 7 }
  0x64   : > { %3347 = vmatpush3.bf16.xpose.msra.mxu1 %v1351_v54  ;;  %3521 = vmatprep.subr.msk.bf16.mxu0 %vm300_vm0, %v3585_v46  ;;  %v3637_v46 = vld [vmem:[%s3798_s25 + $0x438] sm:$0xff]   ;;  %315 = vst.msk [vmem:[#allocation2 + $0x70] sm:$0xff] %vm300_vm0, %v3679_v50  ;;  %316 = vst.msk [vmem:[#allocation2 + $0x78] sm:$0xff] %vm300_vm0, %v3679_v50  ;;  %v4056_v54 = vand.u32 127, %v1465_v51 }
  0x65   : > { %3529 = vmatprep.subr.msk.bf16.mxu1 %vm300_vm0, %v3586_v58  ;;  %3274 = vmatprep.mubr.msk.bf16.mxu0 %vm300_vm0, %v3599_v59  ;;  %317 = vst.msk [vmem:[#allocation2 + $0x80] sm:$0xff] %vm300_vm0, %v3679_v50  ;;  %318 = vst.msk [vmem:[#allocation2 + $0x88] sm:$0xff] %vm300_vm0, %v3679_v50  ;;  %v1467_v53 = vadd.s32 8, %v4053_v52  ;;  %v1469_v56 = vadd.s32 24, %v4053_v52  ;;  %v3646_v51 = vld [vmem:[%s3798_s25 + $0x4d8] sm:$0xff]  }
  0x66   : > { %3306 = vmatprep.mubr.msk.bf16.mxu1 %vm300_vm0, %v3600_v60  ;;  %319 = vst.msk [vmem:[#allocation2 + $0x90] sm:$0xff] %vm300_vm0, %v3679_v50  ;;  %320 = vst.msk [vmem:[#allocation2 + $0x98] sm:$0xff] %vm300_vm0, %v3679_v50  ;;  %vm1503_vm1 = vcmp.le.s32.totalorder %v4056_v54, %v4053_v52 }
  0x67   : > { %321 = vst.msk [vmem:[#allocation2 + $0xa0] sm:$0xff] %vm300_vm0, %v3679_v50  ;;  %322 = vst.msk [vmem:[#allocation2 + $0xa8] sm:$0xff] %vm300_vm0, %v3679_v50  ;;  %vm1504_vm2 = vcmp.le.s32.totalorder %v4056_v54, %v1467_v53  ;;  %vm1506_vm4 = vcmp.le.s32.totalorder %v4056_v54, %v1469_v56 }
  0x68   : > { %323 = vst.msk [vmem:[#allocation2 + $0xb0] sm:$0xff] %vm300_vm0, %v3679_v50  ;;  %324 = vst.msk [vmem:[#allocation2 + $0xb8] sm:$0xff] %vm300_vm0, %v3679_v50 }
  0x69   : > { %325 = vst.msk [vmem:[#allocation2 + $0xc0] sm:$0xff] %vm300_vm0, %v3679_v50  ;;  %326 = vst.msk [vmem:[#allocation2 + $0xc8] sm:$0xff] %vm300_vm0, %v3679_v50 }
  0x6a   : > { %3275 = vmatmul.mubr.msk.bf16.gmra.mrb[12].mxu0 %vm300_vm0, %v3603_v61  ;;  %327 = vst.msk [vmem:[#allocation2 + $0xd0] sm:$0xff] %vm300_vm0, %v3679_v50  ;;  %328 = vst.msk [vmem:[#allocation2 + $0xd8] sm:$0xff] %vm300_vm0, %v3679_v50 }
  0x6b   : > { %3317 = vmatpush3.bf16.xpose.msra.mxu0 %v1129_v55  ;;  %3307 = vmatmul.mubr.msk.bf16.gmra.mrb[12].mxu1 %vm300_vm0, %v3604_v62  ;;  %329 = vst.msk [vmem:[#allocation2 + $0xe0] sm:$0xff] %vm300_vm0, %v3679_v50  ;;  %330 = vst.msk [vmem:[#allocation2 + $0xe8] sm:$0xff] %vm300_vm0, %v3679_v50  ;;  %v1468_v55 = vadd.s32 16, %v4053_v52 }
  0x6c   : > { %3349 = vmatpush3.bf16.xpose.msra.mxu1 %v1354_v0  ;;  %3522 = vmatprep.subr.msk.bf16.mxu0 %vm300_vm0, %v3589_v63  ;;  %331 = vst.msk [vmem:[#allocation2 + $0xf0] sm:$0xff] %vm300_vm0, %v3679_v50  ;;  %332 = vst.msk [vmem:[#allocation2 + $0xf8] sm:$0xff] %vm300_vm0, %v3679_v50 }
  0x6d   : > { %3530 = vmatprep.subr.msk.bf16.mxu1 %vm300_vm0, %v3590_v1  ;;  %3326 = vmatprep.mubr.msk.bf16.mxu0 %vm300_vm0, %v3607_v2  ;;  %333 = vst.msk [vmem:[#allocation2 + $0x100] sm:$0xff] %vm300_vm0, %v3679_v50  ;;  %334 = vst.msk [vmem:[#allocation2 + $0x108] sm:$0xff] %vm300_vm0, %v3679_v50  ;;  %vm1505_vm3 = vcmp.le.s32.totalorder %v4056_v54, %v1468_v55 }
  0x6e   : > { %3358 = vmatprep.mubr.msk.bf16.mxu1 %vm300_vm0, %v3608_v3  ;;  %335 = vst.msk [vmem:[#allocation2 + $0x110] sm:$0xff] %vm300_vm0, %v3679_v50  ;;  %336 = vst.msk [vmem:[#allocation2 + $0x118] sm:$0xff] %vm300_vm0, %v3679_v50 }
  0x6f   : > { %337 = vst.msk [vmem:[#allocation2 + $0x120] sm:$0xff] %vm300_vm0, %v3679_v50  ;;  %338 = vst.msk [vmem:[#allocation2 + $0x128] sm:$0xff] %vm300_vm0, %v3679_v50 }
  0x70   : > { %339 = vst.msk [vmem:[#allocation2 + $0x130] sm:$0xff] %vm300_vm0, %v3679_v50  ;;  %340 = vst.msk [vmem:[#allocation2 + $0x138] sm:$0xff] %vm300_vm0, %v3679_v50 }
  0x71   : > { %341 = vst.msk [vmem:[#allocation2 + $0x140] sm:$0xff] %vm300_vm0, %v3679_v50  ;;  %342 = vst.msk [vmem:[#allocation2 + $0x148] sm:$0xff] %vm300_vm0, %v3679_v50 }
  0x72   : > { %343 = vst.msk [vmem:[#allocation2 + $0x150] sm:$0xff] %vm300_vm0, %v3679_v50  ;;  %344 = vst.msk [vmem:[#allocation2 + $0x158] sm:$0xff] %vm300_vm0, %v3679_v50 }
  0x73   : > { %3319 = vmatpush3.bf16.xpose.msra.mxu0 %v1132_v4  ;;  %345 = vst.msk [vmem:[#allocation2 + $0x160] sm:$0xff] %vm300_vm0, %v3679_v50  ;;  %346 = vst.msk [vmem:[#allocation2 + $0x168] sm:$0xff] %vm300_vm0, %v3679_v50 }
  0x74   : > { %3351 = vmatpush3.bf16.xpose.msra.mxu1 %v1357_v6  ;;  %3523 = vmatprep.subr.msk.bf16.mxu0 %vm300_vm0, %v3595_v5  ;;  %347 = vst.msk [vmem:[#allocation2 + $0x170] sm:$0xff] %vm300_vm0, %v3679_v50  ;;  %348 = vst.msk [vmem:[#allocation2 + $0x178] sm:$0xff] %vm300_vm0, %v3679_v50 }
  0x75   : > { %3531 = vmatprep.subr.msk.bf16.mxu1 %vm300_vm0, %v3596_v7  ;;  %349 = vst.msk [vmem:[#allocation2 + $0x180] sm:$0xff] %vm300_vm0, %v3679_v50  ;;  %350 = vst.msk [vmem:[#allocation2 + $0x188] sm:$0xff] %vm300_vm0, %v3679_v50 }
  0x76   : > { %351 = vst.msk [vmem:[#allocation2 + $0x190] sm:$0xff] %vm300_vm0, %v3679_v50  ;;  %352 = vst.msk [vmem:[#allocation2 + $0x198] sm:$0xff] %vm300_vm0, %v3679_v50 }
  0x77   : > { %353 = vst.msk [vmem:[#allocation2 + $0x1a0] sm:$0xff] %vm300_vm0, %v3679_v50  ;;  %354 = vst.msk [vmem:[#allocation2 + $0x1a8] sm:$0xff] %vm300_vm0, %v3679_v50 }
  0x78   : > { %355 = vst.msk [vmem:[#allocation2 + $0x1b0] sm:$0xff] %vm300_vm0, %v3679_v50  ;;  %356 = vst.msk [vmem:[#allocation2 + $0x1b8] sm:$0xff] %vm300_vm0, %v3679_v50 }
  0x79   : > { %357 = vst.msk [vmem:[#allocation2 + $0x1c0] sm:$0xff] %vm300_vm0, %v3679_v50  ;;  %358 = vst.msk [vmem:[#allocation2 + $0x1c8] sm:$0xff] %vm300_vm0, %v3679_v50 }
  0x7a   : > { %359 = vst.msk [vmem:[#allocation2 + $0x1d0] sm:$0xff] %vm300_vm0, %v3679_v50  ;;  %360 = vst.msk [vmem:[#allocation2 + $0x1d8] sm:$0xff] %vm300_vm0, %v3679_v50 }
  0x7b   : > { %3321 = vmatpush3.bf16.xpose.msra.mxu0 %v1135_v8  ;;  %361 = vst.msk [vmem:[#allocation2 + $0x1e0] sm:$0xff] %vm300_vm0, %v3679_v50  ;;  %362 = vst.msk [vmem:[#allocation2 + $0x1e8] sm:$0xff] %vm300_vm0, %v3679_v50 }
  0x7c   : > { %3353 = vmatpush3.bf16.xpose.msra.mxu1 %v1360_v10  ;;  %3524 = vmatprep.subr.msk.bf16.mxu0 %vm300_vm0, %v3601_v9  ;;  %363 = vst.msk [vmem:[#allocation2 + $0x1f0] sm:$0xff] %vm300_vm0, %v3679_v50  ;;  %364 = vst.msk [vmem:[#allocation2 + $0x1f8] sm:$0xff] %vm300_vm0, %v3679_v50 }
  0x7d   : > { %3532 = vmatprep.subr.msk.bf16.mxu1 %vm300_vm0, %v3602_v11  ;;  %vm4065_vm5 = vmpackc.low %vm1504_vm2, %vm1503_vm1 }
  0x7e   : > { %vm4069_vm6 = vmpackc.low %vm1506_vm4, %vm1505_vm3 }
  0x83   : > { %3323 = vmatpush3.bf16.xpose.msra.mxu0 %v1138_v12 }
  0x84   : > { %3355 = vmatpush3.bf16.xpose.msra.mxu1 %v1363_v14  ;;  %3525 = vmatprep.subr.msk.bf16.mxu0 %vm300_vm0, %v3605_v13  ;;  %v1470_v14 = vadd.s32 32, %v4053_v52 }
  0x85   : > { %3533 = vmatprep.subr.msk.bf16.mxu1 %vm300_vm0, %v3606_v15  ;;  %v1471_v15 = vadd.s32 40, %v4053_v52 }
  0x86   : > { %vm1507_vm7 = vcmp.le.s32.totalorder %v4056_v54, %v1470_v14  ;;  %v1478_v14 = vadd.s32 96, %v4053_v52 }
  0x87   : > { %vm1508_vm8 = vcmp.le.s32.totalorder %v4056_v54, %v1471_v15  ;;  %v1479_v15 = vadd.s32 104, %v4053_v52 }
  0x88   : > { %vm4099_vm11 = vmpackc.low %vm1508_vm8, %vm1507_vm7  ;;  %vm1515_vm4 = vcmp.le.s32.totalorder %v4056_v54, %v1478_v14 }
  0x89   : > { %vm1516_vm7 = vcmp.le.s32.totalorder %v4056_v54, %v1479_v15 }
  0x8b   : > { %3325 = vmatpush3.bf16.xpose.msra.mxu0 %v1141_v16 }
  0x8c   : > { %3357 = vmatpush3.bf16.xpose.msra.mxu1 %v1366_v18  ;;  %3374 = vmatprep.subr.bf16.mxu0 %v3623_v17  ;;  %v1473_v18 = vadd.s32 56, %v4053_v52 }
  0x8d   : > { %3406 = vmatprep.subr.bf16.mxu1 %v3624_v19 }
  0x8e   : > { %vm1510_vm10 = vcmp.le.s32.totalorder %v4056_v54, %v1473_v18  ;;  %v1481_v18 = vadd.s32 120, %v4053_v52 }
  0x92   : > { %3327 = vmatmul.mubr.msk.bf16.vlgmr.msra.gmra.mrb[16].mxu0 %vm300_vm0, %v3609_v20 }
  0x93   : > { %3359 = vmatmul.mubr.msk.bf16.vlgmr.msra.gmra.mrb[16].mxu1 %vm300_vm0, %v3610_v21  ;;  %3330 = vmatprep.mubr.msk.bf16.mxu0 %vm300_vm0, %v3611_v22  ;;  %v3642_v21 = vld [vmem:[%s3798_s25 + $0x4c8] sm:$0xff]  }
  0x94   : > { %3362 = vmatprep.mubr.msk.bf16.mxu1 %vm300_vm0, %v3612_v23  ;;  %3375 = vmatpush3.bf16.msra.mxu0 %v3623_v17  ;;  %v1472_v17 = vadd.s32 48, %v4053_v52 }
  0x95   : > { %3407 = vmatpush3.bf16.msra.mxu1 %v3624_v19  ;;  %3376 = vmatprep.subr.bf16.mxu0 %v3625_v24  ;;  %v3641_v19 = vld [vmem:[%s3798_s25 + $0x488] sm:$0xff]  }
  0x96   : > { %3408 = vmatprep.subr.bf16.mxu1 %v3626_v25  ;;  %vm1509_vm9 = vcmp.le.s32.totalorder %v4056_v54, %v1472_v17  ;;  %v1480_v17 = vadd.s32 112, %v4053_v52 }
  0x97   : > { %vm4103_vm12 = vmpackc.low %vm1510_vm10, %vm1509_vm9  ;;  %vm1518_vm9 = vcmp.le.s32.totalorder %v4056_v54, %v1481_v18 }
  0x98   : > { %3377 = vmatpush3.bf16.msra.mxu0 %v3625_v24  ;;  %vm1517_vm8 = vcmp.le.s32.totalorder %v4056_v54, %v1480_v17  ;;  %vm4163_vm10 = vmpackc.low %vm1516_vm7, %vm1515_vm4 }
  0x99   : > { %3409 = vmatpush3.bf16.msra.mxu1 %v3626_v25  ;;  %3378 = vmatprep.subr.bf16.mxu0 %v3627_v26 }
  0x9a   : > { %3331 = vmatmul.mubr.msk.bf16.gmra.mrb[20].mxu0 %vm300_vm0, %v3613_v27  ;;  %3410 = vmatprep.subr.bf16.mxu1 %v3628_v28 }
  0x9b   : > { %3363 = vmatmul.mubr.msk.bf16.gmra.mrb[20].mxu1 %vm300_vm0, %v3614_v29  ;;  %3334 = vmatprep.mubr.msk.bf16.mxu0 %vm300_vm0, %v3615_v30 }
  0x9c   : > { %3366 = vmatprep.mubr.msk.bf16.mxu1 %vm300_vm0, %v3616_v31  ;;  %3379 = vmatpush3.bf16.msra.mxu0 %v3627_v26 }
  0x9d   : > { %3411 = vmatpush3.bf16.msra.mxu1 %v3628_v28  ;;  %3380 = vmatprep.subr.bf16.mxu0 %v3629_v32 }
  0x9e   : > { %3412 = vmatprep.subr.bf16.mxu1 %v3630_v33 }
  0xa0   : > { %3381 = vmatpush3.bf16.msra.mxu0 %v3629_v32 }
  0xa1   : > { %3413 = vmatpush3.bf16.msra.mxu1 %v3630_v33  ;;  %3382 = vmatprep.subr.bf16.mxu0 %v3631_v34  ;;  %v3643_v33 = vld [vmem:[%s3798_s25 + $0x490] sm:$0xff]  }
  0xa2   : > { %3335 = vmatmul.mubr.msk.bf16.gmra.mrb[24].mxu0 %vm300_vm0, %v3617_v35  ;;  %3414 = vmatprep.subr.bf16.mxu1 %v3632_v36 }
  0xa3   : > { %3367 = vmatmul.mubr.msk.bf16.gmra.mrb[24].mxu1 %vm300_vm0, %v3618_v37  ;;  %3338 = vmatprep.mubr.msk.bf16.mxu0 %vm300_vm0, %v3619_v38  ;;  %v3644_v37 = vld [vmem:[%s3798_s25 + $0x4d0] sm:$0xff]  }
  0xa4   : > { %3370 = vmatprep.mubr.msk.bf16.mxu1 %vm300_vm0, %v3620_v39  ;;  %3383 = vmatpush3.bf16.msra.mxu0 %v3631_v34 }
  0xa5   : > { %3415 = vmatpush3.bf16.msra.mxu1 %v3632_v36  ;;  %3384 = vmatprep.subr.bf16.mxu0 %v3633_v40 }
  0xa6   : > { %3416 = vmatprep.subr.bf16.mxu1 %v3634_v41 }
  0xa8   : > { %3385 = vmatpush3.bf16.msra.mxu0 %v3633_v40 }
  0xa9   : > { %3417 = vmatpush3.bf16.msra.mxu1 %v3634_v41  ;;  %3386 = vmatprep.subr.bf16.mxu0 %v3635_v42 }
  0xaa   : > { %3339 = vmatmul.mubr.msk.bf16.gmra.mrb[28].mxu0 %vm300_vm0, %v3621_v43  ;;  %3418 = vmatprep.subr.bf16.mxu1 %v3636_v44 }
  0xab   : > { %3371 = vmatmul.mubr.msk.bf16.gmra.mrb[28].mxu1 %vm300_vm0, %v3622_v45  ;;  %v1475_v45 = vadd.s32 72, %v4053_v52 }
  0xac   : > { %3387 = vmatpush3.bf16.msra.mxu0 %v3635_v42 }
  0xad   : > { %3419 = vmatpush3.bf16.msra.mxu1 %v3636_v44  ;;  %3388 = vmatprep.subr.bf16.mxu0 %v3637_v46  ;;  %v1474_v44 = vadd.s32 64, %v4053_v52  ;;  %vm1512_vm14 = vcmp.le.s32.totalorder %v4056_v54, %v1475_v45 }
  0xae   : > { %3420 = vmatprep.subr.bf16.mxu1 %v3638_v47 }
  0xaf   : > { %vm1511_vm13 = vcmp.le.s32.totalorder %v4056_v54, %v1474_v44 }
  0xb0   : > { %3389 = vmatpush3.bf16.msra.mxu0 %v3637_v46  ;;  %vm4131_vm2 = vmpackc.low %vm1512_vm14, %vm1511_vm13 }
  0xb1   : > { %3421 = vmatpush3.bf16.msra.mxu1 %v3638_v47  ;;  %3438 = vmatprep.subr.bf16.mxu0 %v3918_v48  ;;  %v1476_v47 = vadd.s32 80, %v4053_v52  ;;  %vm4167_vm13 = vmpackc.low %vm1518_vm9, %vm1517_vm8 }
  0xb2   : > { %3470 = vmatprep.subr.bf16.mxu1 %v3921_v49 }
  0xb3   : > { %vm1513_vm15 = vcmp.le.s32.totalorder %v4056_v54, %v1476_v47 }
 0x125   : > { %v3264_v57 = vpop.f32.mrb[0].mxu0 }
 0x126   : > { %v1521_v58 = vmax.f32 %v3264_v57, 0.0  ;;  %v3296_v59 = vpop.f32.mrb[0].mxu1  ;;  %v727_v60 = vpop.f32.mrb[1].mxu0 }
 0x127   : > { %v1537_v61 = vmax.f32 %v3296_v59, 0.0  ;;  %v952_v62 = vpop.f32.mrb[1].mxu1  ;;  %v3265_v63 = vpop.f32.mrb[2].mxu0  ;;  %v1519_v3 = vmax.f32 %v727_v60, 0.0 }
 0x128   : > { %v1522_v0 = vmax.f32 %v3265_v63, 0.0  ;;  %v3297_v1 = vpop.f32.mrb[2].mxu1  ;;  %v730_v2 = vpop.f32.mrb[3].mxu0  ;;  %v1535_v7 = vmax.f32 %v952_v62, 0.0 }
 0x129   : > { %v1538_v4 = vmax.f32 %v3297_v1, 0.0  ;;  %v1520_v5 = vmax.f32 %v730_v2, 0.0  ;;  %v955_v6 = vpop.f32.mrb[3].mxu1  ;;  %v3647_v1 = vld [vmem:[%s3798_s25 + $0x4a0] sm:$0xff]  }
 0x12a   : > { %v2996_v8 = vpack.c.bf16 %v1522_v0, %v1521_v58  ;;  %v1536_v9 = vmax.f32 %v955_v6, 0.0 }
 0x12b   : > { %v3028_v11 = vpack.c.bf16 %v1538_v4, %v1537_v61  ;;  %v2993_v12 = vpack.c.bf16 %v1520_v5, %v1519_v3  ;;  %v3648_v5 = vld [vmem:[%s3798_s25 + $0x4e0] sm:$0xff]  }
 0x12c   : > { %v3025_v16 = vpack.c.bf16 %v1536_v9, %v1535_v7 }
 0x12d   : > { %3390 = vmatprep.mubr.msk.bf16.mxu0 %vm4065_vm5, %v2993_v12  ;;  %v3268_v20 = vpop.f32.mrb[4].mxu0  ;;  %v1681_v12 = vld [vmem:[#allocation2 + $0x10] sm:$0xff] }
 0x12e   : > { %3422 = vmatprep.mubr.msk.bf16.mxu1 %vm4065_vm5, %v3025_v16  ;;  %3391 = vmatmul.mubr.msk.bf16.vlgmr.msra.gmra.mrb[32].mxu0 %vm4069_vm6, %v2996_v8  ;;  %v1525_v22 = vmax.f32 %v3268_v20, 0.0  ;;  %v3300_v23 = vpop.f32.mrb[4].mxu1  ;;  %v743_v24 = vpop.f32.mrb[5].mxu0 }
 0x12f   : > { %3423 = vmatmul.mubr.msk.bf16.vlgmr.msra.gmra.mrb[32].mxu1 %vm4069_vm6, %v3028_v11  ;;  %v1541_v25 = vmax.f32 %v3300_v23, 0.0  ;;  %v1523_v26 = vmax.f32 %v743_v24, 0.0  ;;  %v968_v27 = vpop.f32.mrb[5].mxu1  ;;  %v3269_v28 = vpop.f32.mrb[6].mxu0  ;;  %3439 = vmatpush3.bf16.msra.mxu0 %v3918_v48  ;;  %v1477_v48 = vadd.s32 88, %v4053_v52 }
 0x130   : > { %v1539_v29 = vmax.f32 %v968_v27, 0.0  ;;  %v1526_v30 = vmax.f32 %v3269_v28, 0.0  ;;  %v3301_v31 = vpop.f32.mrb[6].mxu1  ;;  %v746_v32 = vpop.f32.mrb[7].mxu0  ;;  %3471 = vmatpush3.bf16.msra.mxu1 %v3921_v49  ;;  %3440 = vmatprep.subr.bf16.mxu0 %v3641_v19  ;;  %v3645_v49 = vld [vmem:[%s3798_s25 + $0x498] sm:$0xff]  }
 0x131   : > { %v1542_v34 = vmax.f32 %v3301_v31, 0.0  ;;  %v1524_v35 = vmax.f32 %v746_v32, 0.0  ;;  %v971_v36 = vpop.f32.mrb[7].mxu1  ;;  %3472 = vmatprep.subr.bf16.mxu1 %v3642_v21  ;;  %vm1514_vm1 = vcmp.le.s32.totalorder %v4056_v54, %v1477_v48  ;;  %v3651_v32 = vld [vmem:[%s3798_s25 + $0x4b0] sm:$0xff]   ;;  %v3654_v54 = vld [vmem:[%s3798_s25 + $0x4f8] sm:$0xff]  }
 0x132   : > { %v3002_v38 = vpack.c.bf16 %v1526_v30, %v1525_v22  ;;  %v1540_v39 = vmax.f32 %v971_v36, 0.0  ;;  %vm4135_vm3 = vmpackc.low %vm1514_vm1, %vm1513_vm15  ;;  %v3652_v36 = vld [vmem:[%s3798_s25 + $0x4f0] sm:$0xff]  }
 0x133   : > { %v3034_v41 = vpack.c.bf16 %v1542_v34, %v1541_v25  ;;  %v2999_v42 = vpack.c.bf16 %v1524_v35, %v1523_v26  ;;  %3441 = vmatpush3.bf16.msra.mxu0 %v3641_v19  ;;  %v3649_v19 = vld [vmem:[%s3798_s25 + $0x4a8] sm:$0xff]  }
 0x134   : > { %v3031_v46 = vpack.c.bf16 %v1540_v39, %v1539_v29  ;;  %3473 = vmatpush3.bf16.msra.mxu1 %v3642_v21  ;;  %3442 = vmatprep.subr.bf16.mxu0 %v3643_v33  ;;  %v3650_v21 = vld [vmem:[%s3798_s25 + $0x4e8] sm:$0xff]  }
 0x135   : > { %v3272_v50 = vpop.f32.mrb[8].mxu0  ;;  %3394 = vmatprep.mubr.msk.bf16.mxu0 %vm4099_vm11, %v2999_v42  ;;  %3474 = vmatprep.subr.bf16.mxu1 %v3644_v37 }
 0x136   : > { %v1529_v53 = vmax.f32 %v3272_v50, 0.0  ;;  %v3304_v55 = vpop.f32.mrb[8].mxu1  ;;  %3426 = vmatprep.mubr.msk.bf16.mxu1 %vm4099_vm11, %v3031_v46  ;;  %v759_v56 = vpop.f32.mrb[9].mxu0  ;;  %3395 = vmatmul.mubr.msk.bf16.gmra.mrb[36].mxu0 %vm4103_vm12, %v3002_v38  ;;  %v3653_v46 = vld [vmem:[%s3798_s25 + $0x4b8] sm:$0xff]  }
 0x137   : > { %v1545_v57 = vmax.f32 %v3304_v55, 0.0  ;;  %v1527_v58 = vmax.f32 %v759_v56, 0.0  ;;  %v984_v59 = vpop.f32.mrb[9].mxu1  ;;  %3427 = vmatmul.mubr.msk.bf16.gmra.mrb[36].mxu1 %vm4103_vm12, %v3034_v41  ;;  %v3273_v60 = vpop.f32.mrb[10].mxu0  ;;  %3443 = vmatpush3.bf16.msra.mxu0 %v3643_v33 }
 0x138   : > { %v1543_v61 = vmax.f32 %v984_v59, 0.0  ;;  %v1530_v62 = vmax.f32 %v3273_v60, 0.0  ;;  %v3305_v63 = vpop.f32.mrb[10].mxu1  ;;  %v762_v0 = vpop.f32.mrb[11].mxu0  ;;  %3475 = vmatpush3.bf16.msra.mxu1 %v3644_v37  ;;  %3444 = vmatprep.subr.bf16.mxu0 %v3645_v49 }
 0x139   : > { %v1546_v2 = vmax.f32 %v3305_v63, 0.0  ;;  %v1528_v3 = vmax.f32 %v762_v0, 0.0  ;;  %v987_v4 = vpop.f32.mrb[11].mxu1  ;;  %3476 = vmatprep.subr.bf16.mxu1 %v3646_v51 }
 0x13a   : > { %v3008_v6 = vpack.c.bf16 %v1530_v62, %v1529_v53  ;;  %v1544_v7 = vmax.f32 %v987_v4, 0.0 }
 0x13b   : > { %v3040_v9 = vpack.c.bf16 %v1546_v2, %v1545_v57  ;;  %v3005_v11 = vpack.c.bf16 %v1528_v3, %v1527_v58  ;;  %3445 = vmatpush3.bf16.msra.mxu0 %v3645_v49 }
 0x13c   : > { %v3037_v16 = vpack.c.bf16 %v1544_v7, %v1543_v61  ;;  %3477 = vmatpush3.bf16.msra.mxu1 %v3646_v51  ;;  %3446 = vmatprep.subr.bf16.mxu0 %v3647_v1 }
 0x13d   : > { %v3276_v20 = vpop.f32.mrb[12].mxu0  ;;  %3398 = vmatprep.mubr.msk.bf16.mxu0 %vm4131_vm2, %v3005_v11  ;;  %3478 = vmatprep.subr.bf16.mxu1 %v3648_v5 }
 0x13e   : > { %v1533_v22 = vmax.f32 %v3276_v20, 0.0  ;;  %v3308_v23 = vpop.f32.mrb[12].mxu1  ;;  %3430 = vmatprep.mubr.msk.bf16.mxu1 %vm4131_vm2, %v3037_v16  ;;  %v775_v24 = vpop.f32.mrb[13].mxu0  ;;  %3399 = vmatmul.mubr.msk.bf16.gmra.mrb[40].mxu0 %vm4135_vm3, %v3008_v6 }
 0x13f   : > { %v1549_v25 = vmax.f32 %v3308_v23, 0.0  ;;  %v1531_v26 = vmax.f32 %v775_v24, 0.0  ;;  %v1000_v52 = vpop.f32.mrb[13].mxu1  ;;  %3431 = vmatmul.mubr.msk.bf16.gmra.mrb[40].mxu1 %vm4135_vm3, %v3040_v9  ;;  %v3277_v27 = vpop.f32.mrb[14].mxu0  ;;  %3447 = vmatpush3.bf16.msra.mxu0 %v3647_v1 }
 0x140   : > { %v1547_v28 = vmax.f32 %v1000_v52, 0.0  ;;  %v1534_v29 = vmax.f32 %v3277_v27, 0.0  ;;  %v3309_v30 = vpop.f32.mrb[14].mxu1  ;;  %v778_v31 = vpop.f32.mrb[15].mxu0  ;;  %3479 = vmatpush3.bf16.msra.mxu1 %v3648_v5  ;;  %3448 = vmatprep.subr.bf16.mxu0 %v3649_v19 }
 0x141   : > { %v1550_v33 = vmax.f32 %v3309_v30, 0.0  ;;  %v1532_v34 = vmax.f32 %v778_v31, 0.0  ;;  %v1003_v35 = vpop.f32.mrb[15].mxu1  ;;  %3480 = vmatprep.subr.bf16.mxu1 %v3650_v21 }
 0x142   : > { %v3014_v37 = vpack.c.bf16 %v1534_v29, %v1533_v22  ;;  %v1548_v38 = vmax.f32 %v1003_v35, 0.0 }
 0x143   : > { %v3046_v41 = vpack.c.bf16 %v1550_v33, %v1549_v25  ;;  %v3011_v42 = vpack.c.bf16 %v1532_v34, %v1531_v26  ;;  %3449 = vmatpush3.bf16.msra.mxu0 %v3649_v19 }
 0x144   : > { %v3043_v45 = vpack.c.bf16 %v1548_v38, %v1547_v28  ;;  %3481 = vmatpush3.bf16.msra.mxu1 %v3650_v21  ;;  %3450 = vmatprep.subr.bf16.mxu0 %v3651_v32 }
 0x145   : > { %3402 = vmatprep.mubr.msk.bf16.mxu0 %vm4163_vm10, %v3011_v42  ;;  %3482 = vmatprep.subr.bf16.mxu1 %v3652_v36 }
 0x146   : > { %3434 = vmatprep.mubr.msk.bf16.mxu1 %vm4163_vm10, %v3043_v45  ;;  %3403 = vmatmul.mubr.msk.bf16.gmra.mrb[44].mxu0 %vm4167_vm13, %v3014_v37 }
 0x147   : > { %3435 = vmatmul.mubr.msk.bf16.gmra.mrb[44].mxu1 %vm4167_vm13, %v3046_v41  ;;  %3451 = vmatpush3.bf16.msra.mxu0 %v3651_v32 }
 0x148   : > { %3483 = vmatpush3.bf16.msra.mxu1 %v3652_v36  ;;  %3452 = vmatprep.subr.bf16.mxu0 %v3653_v46 }
 0x149   : > { %3484 = vmatprep.subr.bf16.mxu1 %v3654_v54 }
 0x14b   : > { %3453 = vmatpush3.bf16.msra.mxu0 %v3653_v46 }
 0x14c   : > { %3485 = vmatpush3.bf16.msra.mxu1 %v3654_v54 }
 0x165   : > { %v3328_v47 = vpop.f32.mrb[16].mxu0 }
 0x166   : > { %v3360_v48 = vpop.f32.mrb[16].mxu1  ;;  %v1177_v49 = vpop.f32.mrb[17].mxu0  ;;  %v1553_v53 = vmax.f32 %v3328_v47, 0.0 }
 0x167   : > { %v1402_v50 = vpop.f32.mrb[17].mxu1  ;;  %v3329_v51 = vpop.f32.mrb[18].mxu0  ;;  %v1569_v58 = vmax.f32 %v3360_v48, 0.0  ;;  %v1551_v59 = vmax.f32 %v1177_v49, 0.0 }
 0x168   : > { %v1554_v55 = vmax.f32 %v3329_v51, 0.0  ;;  %v3361_v56 = vpop.f32.mrb[18].mxu1  ;;  %v1180_v57 = vpop.f32.mrb[19].mxu0  ;;  %v1567_v63 = vmax.f32 %v1402_v50, 0.0 }
 0x169   : > { %v1570_v60 = vmax.f32 %v3361_v56, 0.0  ;;  %v1552_v61 = vmax.f32 %v1180_v57, 0.0  ;;  %v1405_v62 = vpop.f32.mrb[19].mxu1 }
 0x16a   : > { %v3060_v0 = vpack.c.bf16 %v1554_v55, %v1553_v53  ;;  %v1568_v1 = vmax.f32 %v1405_v62, 0.0 }
 0x16b   : > { %v3092_v2 = vpack.c.bf16 %v1570_v60, %v1569_v58  ;;  %v3057_v3 = vpack.c.bf16 %v1552_v61, %v1551_v59 }
 0x16c   : > { %v3089_v4 = vpack.c.bf16 %v1568_v1, %v1567_v63 }
 0x16d   : > { %v3332_v5 = vpop.f32.mrb[20].mxu0  ;;  %3454 = vmatprep.mubr.msk.bf16.mxu0 %vm4065_vm5, %v3057_v3 }
 0x16e   : > { %v3364_v6 = vpop.f32.mrb[20].mxu1  ;;  %3486 = vmatprep.mubr.msk.bf16.mxu1 %vm4065_vm5, %v3089_v4  ;;  %v1193_v7 = vpop.f32.mrb[21].mxu0  ;;  %3455 = vmatmul.mubr.msk.bf16.vlgmr.msra.gmra.mrb[48].mxu0 %vm4069_vm6, %v3060_v0  ;;  %v1557_v14 = vmax.f32 %v3332_v5, 0.0  ;;  %v1697_v4 = vld [vmem:[#allocation2 + $0x90] sm:$0xff]  ;;  %v1679_v5 = vld [vmem:[#allocation2] sm:$0xff] }
 0x16f   : > { %v1418_v9 = vpop.f32.mrb[21].mxu1  ;;  %3487 = vmatmul.mubr.msk.bf16.vlgmr.msra.gmra.mrb[48].mxu1 %vm4069_vm6, %v3092_v2  ;;  %v3333_v11 = vpop.f32.mrb[22].mxu0  ;;  %v1573_v18 = vmax.f32 %v3364_v6, 0.0  ;;  %v1555_v19 = vmax.f32 %v1193_v7, 0.0  ;;  %v1695_v7 = vld [vmem:[#allocation2 + $0x80] sm:$0xff] }
 0x170   : > { %v1558_v15 = vmax.f32 %v3333_v11, 0.0  ;;  %v3365_v16 = vpop.f32.mrb[22].mxu1  ;;  %v1196_v17 = vpop.f32.mrb[23].mxu0  ;;  %v1571_v10 = vmax.f32 %v1418_v9, 0.0  ;;  %v1682_v9 = vld [vmem:[#allocation2 + $0x18] sm:$0xff] }
 0x171   : > { %v1574_v20 = vmax.f32 %v3365_v16, 0.0  ;;  %v1556_v21 = vmax.f32 %v1196_v17, 0.0  ;;  %v1421_v22 = vpop.f32.mrb[23].mxu1  ;;  %v1698_v16 = vld [vmem:[#allocation2 + $0x98] sm:$0xff]  ;;  %v1680_v17 = vld [vmem:[#allocation2 + $0x8] sm:$0xff] }
 0x172   : > { %v3066_v23 = vpack.c.bf16 %v1558_v15, %v1557_v14  ;;  %v1572_v24 = vmax.f32 %v1421_v22, 0.0 }
 0x173   : > { %v3098_v25 = vpack.c.bf16 %v1574_v20, %v1573_v18  ;;  %v3063_v26 = vpack.c.bf16 %v1556_v21, %v1555_v19  ;;  %v1696_v21 = vld [vmem:[#allocation2 + $0x88] sm:$0xff] }
 0x174   : > { %v3095_v52 = vpack.c.bf16 %v1572_v24, %v1571_v10 }
 0x175   : > { %v3336_v27 = vpop.f32.mrb[24].mxu0  ;;  %3458 = vmatprep.mubr.msk.bf16.mxu0 %vm4099_vm11, %v3063_v26 }
 0x176   : > { %v3368_v13 = vpop.f32.mrb[24].mxu1  ;;  %3490 = vmatprep.mubr.msk.bf16.mxu1 %vm4099_vm11, %v3095_v52  ;;  %v1209_v28 = vpop.f32.mrb[25].mxu0  ;;  %3459 = vmatmul.mubr.msk.bf16.gmra.mrb[52].mxu0 %vm4103_vm12, %v3066_v23  ;;  %v1561_v31 = vmax.f32 %v3336_v27, 0.0  ;;  %v1685_v27 = vld [vmem:[#allocation2 + $0x30] sm:$0xff] }
 0x177   : > { %v1434_v29 = vpop.f32.mrb[25].mxu1  ;;  %3491 = vmatmul.mubr.msk.bf16.gmra.mrb[52].mxu1 %vm4103_vm12, %v3098_v25  ;;  %v3337_v30 = vpop.f32.mrb[26].mxu0  ;;  %v1577_v35 = vmax.f32 %v3368_v13, 0.0  ;;  %v1559_v36 = vmax.f32 %v1209_v28, 0.0  ;;  %v1701_v13 = vld [vmem:[#allocation2 + $0xb0] sm:$0xff]  ;;  %v1683_v28 = vld [vmem:[#allocation2 + $0x20] sm:$0xff] }
 0x178   : > { %v1562_v32 = vmax.f32 %v3337_v30, 0.0  ;;  %v3369_v33 = vpop.f32.mrb[26].mxu1  ;;  %v1212_v34 = vpop.f32.mrb[27].mxu0  ;;  %v1575_v40 = vmax.f32 %v1434_v29, 0.0  ;;  %v1699_v30 = vld [vmem:[#allocation2 + $0xa0] sm:$0xff] }
 0x179   : > { %v1578_v37 = vmax.f32 %v3369_v33, 0.0  ;;  %v1560_v38 = vmax.f32 %v1212_v34, 0.0  ;;  %v1437_v41 = vpop.f32.mrb[27].mxu1 }
 0x17a   : > { %v3072_v42 = vpack.c.bf16 %v1562_v32, %v1561_v31  ;;  %v1576_v45 = vmax.f32 %v1437_v41, 0.0  ;;  %v1686_v31 = vld [vmem:[#allocation2 + $0x38] sm:$0xff] }
 0x17b   : > { %v3104_v46 = vpack.c.bf16 %v1578_v37, %v1577_v35  ;;  %v3069_v54 = vpack.c.bf16 %v1560_v38, %v1559_v36  ;;  %v1702_v35 = vld [vmem:[#allocation2 + $0xb8] sm:$0xff]  ;;  %v1684_v36 = vld [vmem:[#allocation2 + $0x28] sm:$0xff] }
 0x17c   : > { %v3101_v47 = vpack.c.bf16 %v1576_v45, %v1575_v40  ;;  %v1700_v45 = vld [vmem:[#allocation2 + $0xa8] sm:$0xff] }
 0x17d   : > { %v3340_v48 = vpop.f32.mrb[28].mxu0  ;;  %3462 = vmatprep.mubr.msk.bf16.mxu0 %vm4131_vm2, %v3069_v54 }
 0x17e   : > { %v3372_v43 = vpop.f32.mrb[28].mxu1  ;;  %3494 = vmatprep.mubr.msk.bf16.mxu1 %vm4131_vm2, %v3101_v47  ;;  %v1225_v49 = vpop.f32.mrb[29].mxu0  ;;  %3463 = vmatmul.mubr.msk.bf16.gmra.mrb[56].mxu0 %vm4135_vm3, %v3072_v42  ;;  %v1565_v53 = vmax.f32 %v3340_v48, 0.0 }
 0x17f   : > { %v1450_v50 = vpop.f32.mrb[29].mxu1  ;;  %3495 = vmatmul.mubr.msk.bf16.gmra.mrb[56].mxu1 %vm4135_vm3, %v3104_v46  ;;  %v3341_v51 = vpop.f32.mrb[30].mxu0  ;;  %v1581_v58 = vmax.f32 %v3372_v43, 0.0  ;;  %v1563_v59 = vmax.f32 %v1225_v49, 0.0 }
 0x180   : > { %v1566_v55 = vmax.f32 %v3341_v51, 0.0  ;;  %v3373_v56 = vpop.f32.mrb[30].mxu1  ;;  %v1228_v57 = vpop.f32.mrb[31].mxu0  ;;  %v1579_v8 = vmax.f32 %v1450_v50, 0.0 }
 0x181   : > { %v1582_v60 = vmax.f32 %v3373_v56, 0.0  ;;  %v1564_v61 = vmax.f32 %v1228_v57, 0.0  ;;  %v1453_v62 = vpop.f32.mrb[31].mxu1 }
 0x182   : > { %v3078_v63 = vpack.c.bf16 %v1566_v55, %v1565_v53  ;;  %v1580_v0 = vmax.f32 %v1453_v62, 0.0  ;;  %v1705_v62 = vld [vmem:[#allocation2 + $0xd0] sm:$0xff] }
 0x183   : > { %v3110_v1 = vpack.c.bf16 %v1582_v60, %v1581_v58  ;;  %v3075_v2 = vpack.c.bf16 %v1564_v61, %v1563_v59  ;;  %v1689_v61 = vld [vmem:[#allocation2 + $0x50] sm:$0xff] }
 0x184   : > { %v3107_v3 = vpack.c.bf16 %v1580_v0, %v1579_v8  ;;  %v1687_v8 = vld [vmem:[#allocation2 + $0x40] sm:$0xff] }
 0x185   : > { %3466 = vmatprep.mubr.msk.bf16.mxu0 %vm4163_vm10, %v3075_v2  ;;  %v1703_v0 = vld [vmem:[#allocation2 + $0xc0] sm:$0xff] }
 0x186   : > { %3498 = vmatprep.mubr.msk.bf16.mxu1 %vm4163_vm10, %v3107_v3  ;;  %3467 = vmatmul.mubr.msk.bf16.gmra.mrb[60].mxu0 %vm4167_vm13, %v3078_v63 }
 0x187   : > { %3499 = vmatmul.mubr.msk.bf16.gmra.mrb[60].mxu1 %vm4167_vm13, %v3110_v1  ;;  %v1690_v1 = vld [vmem:[#allocation2 + $0x58] sm:$0xff] }
 0x201   : > { %v3392_v6 = vpop.f32.mrb[32].mxu0 }
 0x202   : > { %v2357_v11 = vadd.f32 %v3392_v6, %v1681_v12  ;;  %v3424_v14 = vpop.f32.mrb[32].mxu1  ;;  %v1857_v15 = vpop.f32.mrb[33].mxu0 }
 0x203   : > { %v2373_v39 = vadd.f32 %v3424_v14, %v1697_v4  ;;  %v2355_v18 = vadd.f32 %v1857_v15, %v1679_v5  ;;  %v2002_v19 = vpop.f32.mrb[33].mxu1  ;;  %v3393_v20 = vpop.f32.mrb[34].mxu0  ;;  %v1706_v4 = vld [vmem:[#allocation2 + $0xd8] sm:$0xff]  ;;  %v1688_v5 = vld [vmem:[#allocation2 + $0x48] sm:$0xff] }
 0x204   : > { %2421 = vst.msk [vmem:[#allocation2 + $0x10] sm:$0xff] %vm300_vm0, %v2357_v11  ;;  %v2371_v44 = vadd.f32 %v2002_v19, %v1695_v7  ;;  %v2358_v22 = vadd.f32 %v3393_v20, %v1682_v9  ;;  %v3425_v10 = vpop.f32.mrb[34].mxu1  ;;  %v1860_v23 = vpop.f32.mrb[35].mxu0  ;;  %v1704_v15 = vld [vmem:[#allocation2 + $0xc8] sm:$0xff] }
 0x205   : > { %2437 = vst.msk [vmem:[#allocation2 + $0x90] sm:$0xff] %vm300_vm0, %v2373_v39  ;;  %2419 = vst.msk [vmem:[#allocation2] sm:$0xff] %vm300_vm0, %v2355_v18  ;;  %v2374_v24 = vadd.f32 %v3425_v10, %v1698_v16  ;;  %v2356_v25 = vadd.f32 %v1860_v23, %v1680_v17  ;;  %v2005_v26 = vpop.f32.mrb[35].mxu1 }
 0x206   : > { %2435 = vst.msk [vmem:[#allocation2 + $0x80] sm:$0xff] %vm300_vm0, %v2371_v44  ;;  %2422 = vst.msk [vmem:[#allocation2 + $0x18] sm:$0xff] %vm300_vm0, %v2358_v22  ;;  %v2372_v52 = vadd.f32 %v2005_v26, %v1696_v21 }
 0x207   : > { %2438 = vst.msk [vmem:[#allocation2 + $0x98] sm:$0xff] %vm300_vm0, %v2374_v24  ;;  %2420 = vst.msk [vmem:[#allocation2 + $0x8] sm:$0xff] %vm300_vm0, %v2356_v25 }
 0x208   : > { %2436 = vst.msk [vmem:[#allocation2 + $0x88] sm:$0xff] %vm300_vm0, %v2372_v52 }
 0x209   : > { %v3396_v29 = vpop.f32.mrb[36].mxu0 }
 0x20a   : > { %v2361_v32 = vadd.f32 %v3396_v29, %v1685_v27  ;;  %v3428_v33 = vpop.f32.mrb[36].mxu1  ;;  %v1873_v34 = vpop.f32.mrb[37].mxu0  ;;  %v1693_v27 = vld [vmem:[#allocation2 + $0x70] sm:$0xff] }
 0x20b   : > { %v2488_v37 = vld [vmem:[#allocation2 + $0x10] sm:$0xff]  ;;  %v2377_v38 = vadd.f32 %v3428_v33, %v1701_v13  ;;  %v2359_v41 = vadd.f32 %v1873_v34, %v1683_v28  ;;  %v2018_v40 = vpop.f32.mrb[37].mxu1  ;;  %v3397_v42 = vpop.f32.mrb[38].mxu0  ;;  %v1691_v28 = vld [vmem:[#allocation2 + $0x60] sm:$0xff] }
 0x20c   : > { %2553 = vst.msk [vmem:[%s4225_s29 + $0x10] sm:$0xff] %vm300_vm0, %v2488_v37  ;;  %v2504_v46 = vld [vmem:[#allocation2 + $0x90] sm:$0xff]  ;;  %v2486_v54 = vld [vmem:[#allocation2] sm:$0xff]  ;;  %2425 = vst.msk [vmem:[#allocation2 + $0x30] sm:$0xff] %vm300_vm0, %v2361_v32  ;;  %v2375_v47 = vadd.f32 %v2018_v40, %v1699_v30  ;;  %v2362_v48 = vadd.f32 %v3397_v42, %v1686_v31  ;;  %v3429_v43 = vpop.f32.mrb[38].mxu1  ;;  %v1876_v49 = vpop.f32.mrb[39].mxu0 }
 0x20d   : > { %2569 = vst.msk [vmem:[%s4225_s29 + $0x90] sm:$0xff] %vm300_vm0, %v2504_v46  ;;  %2551 = vst.msk [vmem:[%s4225_s29] sm:$0xff] %vm300_vm0, %v2486_v54  ;;  %v2502_v50 = vld [vmem:[#allocation2 + $0x80] sm:$0xff]  ;;  %v2489_v51 = vld [vmem:[#allocation2 + $0x18] sm:$0xff]  ;;  %v2378_v53 = vadd.f32 %v3429_v43, %v1702_v35  ;;  %v2360_v55 = vadd.f32 %v1876_v49, %v1684_v36  ;;  %v2021_v56 = vpop.f32.mrb[39].mxu1 }
 0x20e   : > { %2441 = vst.msk [vmem:[#allocation2 + $0xb0] sm:$0xff] %vm300_vm0, %v2377_v38  ;;  %2423 = vst.msk [vmem:[#allocation2 + $0x20] sm:$0xff] %vm300_vm0, %v2359_v41  ;;  %v2505_v57 = vld [vmem:[#allocation2 + $0x98] sm:$0xff]  ;;  %v2487_v58 = vld [vmem:[#allocation2 + $0x8] sm:$0xff]  ;;  %v2376_v59 = vadd.f32 %v2021_v56, %v1700_v45 }
 0x20f   : > { %2567 = vst.msk [vmem:[%s4225_s29 + $0x80] sm:$0xff] %vm300_vm0, %v2502_v50  ;;  %2554 = vst.msk [vmem:[%s4225_s29 + $0x18] sm:$0xff] %vm300_vm0, %v2489_v51  ;;  %v2503_v60 = vld [vmem:[#allocation2 + $0x88] sm:$0xff]  ;;  %v1709_v13 = vld [vmem:[#allocation2 + $0xf0] sm:$0xff] }
 0x210   : > { %2439 = vst.msk [vmem:[#allocation2 + $0xa0] sm:$0xff] %vm300_vm0, %v2375_v47  ;;  %2426 = vst.msk [vmem:[#allocation2 + $0x38] sm:$0xff] %vm300_vm0, %v2362_v48  ;;  %v1707_v30 = vld [vmem:[#allocation2 + $0xe0] sm:$0xff]  ;;  %v1694_v31 = vld [vmem:[#allocation2 + $0x78] sm:$0xff] }
 0x211   : > { %2570 = vst.msk [vmem:[%s4225_s29 + $0x98] sm:$0xff] %vm300_vm0, %v2505_v57  ;;  %2552 = vst.msk [vmem:[%s4225_s29 + $0x8] sm:$0xff] %vm300_vm0, %v2487_v58  ;;  %v3400_v63 = vpop.f32.mrb[40].mxu0  ;;  %v1710_v35 = vld [vmem:[#allocation2 + $0xf8] sm:$0xff]  ;;  %v1692_v36 = vld [vmem:[#allocation2 + $0x68] sm:$0xff] }
 0x212   : > { %2442 = vst.msk [vmem:[#allocation2 + $0xb8] sm:$0xff] %vm300_vm0, %v2378_v53  ;;  %2424 = vst.msk [vmem:[#allocation2 + $0x28] sm:$0xff] %vm300_vm0, %v2360_v55  ;;  %v2365_v2 = vadd.f32 %v3400_v63, %v1689_v61  ;;  %v3432_v3 = vpop.f32.mrb[40].mxu1  ;;  %v1889_v12 = vpop.f32.mrb[41].mxu0  ;;  %v1708_v45 = vld [vmem:[#allocation2 + $0xe8] sm:$0xff] }
 0x213   : > { %2568 = vst.msk [vmem:[%s4225_s29 + $0x88] sm:$0xff] %vm300_vm0, %v2503_v60  ;;  %2440 = vst.msk [vmem:[#allocation2 + $0xa8] sm:$0xff] %vm300_vm0, %v2376_v59  ;;  %v2492_v6 = vld [vmem:[#allocation2 + $0x30] sm:$0xff]  ;;  %v2381_v7 = vadd.f32 %v3432_v3, %v1705_v62  ;;  %v2363_v9 = vadd.f32 %v1889_v12, %v1687_v8  ;;  %v2034_v11 = vpop.f32.mrb[41].mxu1  ;;  %v3401_v14 = vpop.f32.mrb[42].mxu0 }
 0x214   : > { %2557 = vst.msk [vmem:[%s4225_s29 + $0x30] sm:$0xff] %vm300_vm0, %v2492_v6  ;;  %2429 = vst.msk [vmem:[#allocation2 + $0x50] sm:$0xff] %vm300_vm0, %v2365_v2  ;;  %v2379_v39 = vadd.f32 %v2034_v11, %v1703_v0  ;;  %v2366_v18 = vadd.f32 %v3401_v14, %v1690_v1  ;;  %v3433_v19 = vpop.f32.mrb[42].mxu1  ;;  %v1892_v20 = vpop.f32.mrb[43].mxu0  ;;  %v1713_v12 = vld [vmem:[#allocation2 + $0x110] sm:$0xff] }
 0x215   : > { %v2508_v16 = vld [vmem:[#allocation2 + $0xb0] sm:$0xff]  ;;  %v2490_v17 = vld [vmem:[#allocation2 + $0x20] sm:$0xff]  ;;  %2445 = vst.msk [vmem:[#allocation2 + $0xd0] sm:$0xff] %vm300_vm0, %v2381_v7  ;;  %2427 = vst.msk [vmem:[#allocation2 + $0x40] sm:$0xff] %vm300_vm0, %v2363_v9  ;;  %v2382_v22 = vadd.f32 %v3433_v19, %v1706_v4  ;;  %v2364_v10 = vadd.f32 %v1892_v20, %v1688_v5  ;;  %v2037_v23 = vpop.f32.mrb[43].mxu1 }
 0x216   : > { %2573 = vst.msk [vmem:[%s4225_s29 + $0xb0] sm:$0xff] %vm300_vm0, %v2508_v16  ;;  %2555 = vst.msk [vmem:[%s4225_s29 + $0x20] sm:$0xff] %vm300_vm0, %v2490_v17  ;;  %v2380_v26 = vadd.f32 %v2037_v23, %v1704_v15  ;;  %v1729_v4 = vld [vmem:[#allocation2 + $0x190] sm:$0xff]  ;;  %v1711_v5 = vld [vmem:[#allocation2 + $0x100] sm:$0xff] }
 0x217   : > { %v2506_v21 = vld [vmem:[#allocation2 + $0xa0] sm:$0xff]  ;;  %v2493_v44 = vld [vmem:[#allocation2 + $0x38] sm:$0xff]  ;;  %2443 = vst.msk [vmem:[#allocation2 + $0xc0] sm:$0xff] %vm300_vm0, %v2379_v39  ;;  %2430 = vst.msk [vmem:[#allocation2 + $0x58] sm:$0xff] %vm300_vm0, %v2366_v18 }
 0x218   : > { %2571 = vst.msk [vmem:[%s4225_s29 + $0xa0] sm:$0xff] %vm300_vm0, %v2506_v21  ;;  %2558 = vst.msk [vmem:[%s4225_s29 + $0x38] sm:$0xff] %vm300_vm0, %v2493_v44  ;;  %v1727_v7 = vld [vmem:[#allocation2 + $0x180] sm:$0xff]  ;;  %v1714_v9 = vld [vmem:[#allocation2 + $0x118] sm:$0xff] }
 0x219   : > { %v2509_v24 = vld [vmem:[#allocation2 + $0xb8] sm:$0xff]  ;;  %v2491_v25 = vld [vmem:[#allocation2 + $0x28] sm:$0xff]  ;;  %2446 = vst.msk [vmem:[#allocation2 + $0xd8] sm:$0xff] %vm300_vm0, %v2382_v22  ;;  %2428 = vst.msk [vmem:[#allocation2 + $0x48] sm:$0xff] %vm300_vm0, %v2364_v10  ;;  %v3404_v29 = vpop.f32.mrb[44].mxu0 }
 0x21a   : > { %2574 = vst.msk [vmem:[%s4225_s29 + $0xb8] sm:$0xff] %vm300_vm0, %v2509_v24  ;;  %2556 = vst.msk [vmem:[%s4225_s29 + $0x28] sm:$0xff] %vm300_vm0, %v2491_v25  ;;  %v2507_v52 = vld [vmem:[#allocation2 + $0xa8] sm:$0xff]  ;;  %v2369_v32 = vadd.f32 %v3404_v29, %v1693_v27  ;;  %v3436_v33 = vpop.f32.mrb[44].mxu1  ;;  %v1905_v34 = vpop.f32.mrb[45].mxu0  ;;  %v1730_v16 = vld [vmem:[#allocation2 + $0x198] sm:$0xff] }
 0x21b   : > { %2572 = vst.msk [vmem:[%s4225_s29 + $0xa8] sm:$0xff] %vm300_vm0, %v2507_v52  ;;  %2444 = vst.msk [vmem:[#allocation2 + $0xc8] sm:$0xff] %vm300_vm0, %v2380_v26  ;;  %v2496_v37 = vld [vmem:[#allocation2 + $0x50] sm:$0xff]  ;;  %v2385_v38 = vadd.f32 %v3436_v33, %v1709_v13  ;;  %v2367_v41 = vadd.f32 %v1905_v34, %v1691_v28  ;;  %v2050_v40 = vpop.f32.mrb[45].mxu1  ;;  %v3405_v42 = vpop.f32.mrb[46].mxu0  ;;  %v1712_v17 = vld [vmem:[#allocation2 + $0x108] sm:$0xff] }
 0x21c   : > { %2561 = vst.msk [vmem:[%s4225_s29 + $0x50] sm:$0xff] %vm300_vm0, %v2496_v37  ;;  %v2512_v46 = vld [vmem:[#allocation2 + $0xd0] sm:$0xff]  ;;  %v2494_v54 = vld [vmem:[#allocation2 + $0x40] sm:$0xff]  ;;  %2433 = vst.msk [vmem:[#allocation2 + $0x70] sm:$0xff] %vm300_vm0, %v2369_v32  ;;  %v2383_v47 = vadd.f32 %v2050_v40, %v1707_v30  ;;  %v2370_v48 = vadd.f32 %v3405_v42, %v1694_v31  ;;  %v3437_v43 = vpop.f32.mrb[46].mxu1  ;;  %v1908_v49 = vpop.f32.mrb[47].mxu0 }
 0x21d   : > { %2577 = vst.msk [vmem:[%s4225_s29 + $0xd0] sm:$0xff] %vm300_vm0, %v2512_v46  ;;  %2559 = vst.msk [vmem:[%s4225_s29 + $0x40] sm:$0xff] %vm300_vm0, %v2494_v54  ;;  %v2386_v53 = vadd.f32 %v3437_v43, %v1710_v35  ;;  %v2368_v55 = vadd.f32 %v1908_v49, %v1692_v36  ;;  %v2053_v56 = vpop.f32.mrb[47].mxu1  ;;  %v1728_v21 = vld [vmem:[#allocation2 + $0x188] sm:$0xff]  ;;  %v1717_v27 = vld [vmem:[#allocation2 + $0x130] sm:$0xff] }
 0x21e   : > { %v2510_v50 = vld [vmem:[#allocation2 + $0xc0] sm:$0xff]  ;;  %v2497_v51 = vld [vmem:[#allocation2 + $0x58] sm:$0xff]  ;;  %2449 = vst.msk [vmem:[#allocation2 + $0xf0] sm:$0xff] %vm300_vm0, %v2385_v38  ;;  %2431 = vst.msk [vmem:[#allocation2 + $0x60] sm:$0xff] %vm300_vm0, %v2367_v41  ;;  %v2384_v59 = vadd.f32 %v2053_v56, %v1708_v45 }
 0x21f   : > { %2575 = vst.msk [vmem:[%s4225_s29 + $0xc0] sm:$0xff] %vm300_vm0, %v2510_v50  ;;  %2562 = vst.msk [vmem:[%s4225_s29 + $0x58] sm:$0xff] %vm300_vm0, %v2497_v51  ;;  %v1733_v13 = vld [vmem:[#allocation2 + $0x1b0] sm:$0xff]  ;;  %v1715_v28 = vld [vmem:[#allocation2 + $0x120] sm:$0xff] }
 0x220   : > { %v2513_v57 = vld [vmem:[#allocation2 + $0xd8] sm:$0xff]  ;;  %v2495_v58 = vld [vmem:[#allocation2 + $0x48] sm:$0xff]  ;;  %2447 = vst.msk [vmem:[#allocation2 + $0xe0] sm:$0xff] %vm300_vm0, %v2383_v47  ;;  %2434 = vst.msk [vmem:[#allocation2 + $0x78] sm:$0xff] %vm300_vm0, %v2370_v48 }
 0x221   : > { %2578 = vst.msk [vmem:[%s4225_s29 + $0xd8] sm:$0xff] %vm300_vm0, %v2513_v57  ;;  %2560 = vst.msk [vmem:[%s4225_s29 + $0x48] sm:$0xff] %vm300_vm0, %v2495_v58  ;;  %v1731_v30 = vld [vmem:[#allocation2 + $0x1a0] sm:$0xff]  ;;  %v1718_v31 = vld [vmem:[#allocation2 + $0x138] sm:$0xff] }
 0x222   : > { %v2511_v60 = vld [vmem:[#allocation2 + $0xc8] sm:$0xff]  ;;  %2450 = vst.msk [vmem:[#allocation2 + $0xf8] sm:$0xff] %vm300_vm0, %v2386_v53  ;;  %2432 = vst.msk [vmem:[#allocation2 + $0x68] sm:$0xff] %vm300_vm0, %v2368_v55  ;;  %v1734_v35 = vld [vmem:[#allocation2 + $0x1b8] sm:$0xff] }
 0x223   : > { %2576 = vst.msk [vmem:[%s4225_s29 + $0xc8] sm:$0xff] %vm300_vm0, %v2511_v60  ;;  %2448 = vst.msk [vmem:[#allocation2 + $0xe8] sm:$0xff] %vm300_vm0, %v2384_v59  ;;  %v2500_v61 = vld [vmem:[#allocation2 + $0x70] sm:$0xff]  ;;  %v1716_v36 = vld [vmem:[#allocation2 + $0x128] sm:$0xff] }
 0x224   : > { %2565 = vst.msk [vmem:[%s4225_s29 + $0x70] sm:$0xff] %vm300_vm0, %v2500_v61  ;;  %v1732_v45 = vld [vmem:[#allocation2 + $0x1a8] sm:$0xff]  ;;  %v1721_v61 = vld [vmem:[#allocation2 + $0x150] sm:$0xff] }
 0x225   : > { %v2516_v62 = vld [vmem:[#allocation2 + $0xf0] sm:$0xff]  ;;  %v2498_v8 = vld [vmem:[#allocation2 + $0x60] sm:$0xff] }
 0x226   : > { %2581 = vst.msk [vmem:[%s4225_s29 + $0xf0] sm:$0xff] %vm300_vm0, %v2516_v62  ;;  %2563 = vst.msk [vmem:[%s4225_s29 + $0x60] sm:$0xff] %vm300_vm0, %v2498_v8  ;;  %v1737_v62 = vld [vmem:[#allocation2 + $0x1d0] sm:$0xff]  ;;  %v1719_v8 = vld [vmem:[#allocation2 + $0x140] sm:$0xff] }
 0x227   : > { %v2514_v63 = vld [vmem:[#allocation2 + $0xe0] sm:$0xff]  ;;  %v2501_v0 = vld [vmem:[#allocation2 + $0x78] sm:$0xff] }
 0x228   : > { %2579 = vst.msk [vmem:[%s4225_s29 + $0xe0] sm:$0xff] %vm300_vm0, %v2514_v63  ;;  %2566 = vst.msk [vmem:[%s4225_s29 + $0x78] sm:$0xff] %vm300_vm0, %v2501_v0  ;;  %v1735_v0 = vld [vmem:[#allocation2 + $0x1c0] sm:$0xff] }
 0x229   : > { %v2517_v1 = vld [vmem:[#allocation2 + $0xf8] sm:$0xff]  ;;  %v2499_v2 = vld [vmem:[#allocation2 + $0x68] sm:$0xff] }
 0x22a   : > { %2582 = vst.msk [vmem:[%s4225_s29 + $0xf8] sm:$0xff] %vm300_vm0, %v2517_v1  ;;  %2564 = vst.msk [vmem:[%s4225_s29 + $0x68] sm:$0xff] %vm300_vm0, %v2499_v2  ;;  %v2515_v3 = vld [vmem:[#allocation2 + $0xe8] sm:$0xff]  ;;  %v1722_v1 = vld [vmem:[#allocation2 + $0x158] sm:$0xff] }
 0x22b   : > { %2580 = vst.msk [vmem:[%s4225_s29 + $0xe8] sm:$0xff] %vm300_vm0, %v2515_v3 }
 0x241   : > { %v3456_v6 = vpop.f32.mrb[48].mxu0 }
 0x242   : > { %v2389_v11 = vadd.f32 %v3456_v6, %v1713_v12  ;;  %v3488_v14 = vpop.f32.mrb[48].mxu1  ;;  %v2147_v15 = vpop.f32.mrb[49].mxu0 }
 0x243   : > { %v2405_v39 = vadd.f32 %v3488_v14, %v1729_v4  ;;  %v2387_v18 = vadd.f32 %v2147_v15, %v1711_v5  ;;  %v2292_v19 = vpop.f32.mrb[49].mxu1  ;;  %v3457_v20 = vpop.f32.mrb[50].mxu0  ;;  %v1738_v4 = vld [vmem:[#allocation2 + $0x1d8] sm:$0xff]  ;;  %v1720_v5 = vld [vmem:[#allocation2 + $0x148] sm:$0xff] }
 0x244   : > { %2453 = vst.msk [vmem:[#allocation2 + $0x110] sm:$0xff] %vm300_vm0, %v2389_v11  ;;  %v2403_v44 = vadd.f32 %v2292_v19, %v1727_v7  ;;  %v2390_v22 = vadd.f32 %v3457_v20, %v1714_v9  ;;  %v3489_v10 = vpop.f32.mrb[50].mxu1  ;;  %v2150_v23 = vpop.f32.mrb[51].mxu0  ;;  %v1736_v15 = vld [vmem:[#allocation2 + $0x1c8] sm:$0xff] }
 0x245   : > { %2469 = vst.msk [vmem:[#allocation2 + $0x190] sm:$0xff] %vm300_vm0, %v2405_v39  ;;  %2451 = vst.msk [vmem:[#allocation2 + $0x100] sm:$0xff] %vm300_vm0, %v2387_v18  ;;  %v2406_v24 = vadd.f32 %v3489_v10, %v1730_v16  ;;  %v2388_v25 = vadd.f32 %v2150_v23, %v1712_v17  ;;  %v2295_v26 = vpop.f32.mrb[51].mxu1 }
 0x246   : > { %2467 = vst.msk [vmem:[#allocation2 + $0x180] sm:$0xff] %vm300_vm0, %v2403_v44  ;;  %2454 = vst.msk [vmem:[#allocation2 + $0x118] sm:$0xff] %vm300_vm0, %v2390_v22  ;;  %v2404_v52 = vadd.f32 %v2295_v26, %v1728_v21 }
 0x247   : > { %2470 = vst.msk [vmem:[#allocation2 + $0x198] sm:$0xff] %vm300_vm0, %v2406_v24  ;;  %2452 = vst.msk [vmem:[#allocation2 + $0x108] sm:$0xff] %vm300_vm0, %v2388_v25 }
 0x248   : > { %2468 = vst.msk [vmem:[#allocation2 + $0x188] sm:$0xff] %vm300_vm0, %v2404_v52 }
 0x249   : > { %v3460_v29 = vpop.f32.mrb[52].mxu0 }
 0x24a   : > { %v2393_v32 = vadd.f32 %v3460_v29, %v1717_v27  ;;  %v3492_v33 = vpop.f32.mrb[52].mxu1  ;;  %v2163_v34 = vpop.f32.mrb[53].mxu0  ;;  %v1725_v27 = vld [vmem:[#allocation2 + $0x170] sm:$0xff] }
 0x24b   : > { %v2520_v37 = vld [vmem:[#allocation2 + $0x110] sm:$0xff]  ;;  %v2409_v38 = vadd.f32 %v3492_v33, %v1733_v13  ;;  %v2391_v41 = vadd.f32 %v2163_v34, %v1715_v28  ;;  %v2308_v40 = vpop.f32.mrb[53].mxu1  ;;  %v3461_v42 = vpop.f32.mrb[54].mxu0  ;;  %v1723_v28 = vld [vmem:[#allocation2 + $0x160] sm:$0xff] }
 0x24c   : > { %2585 = vst.msk [vmem:[%s4225_s29 + $0x110] sm:$0xff] %vm300_vm0, %v2520_v37  ;;  %v2536_v46 = vld [vmem:[#allocation2 + $0x190] sm:$0xff]  ;;  %v2518_v54 = vld [vmem:[#allocation2 + $0x100] sm:$0xff]  ;;  %2457 = vst.msk [vmem:[#allocation2 + $0x130] sm:$0xff] %vm300_vm0, %v2393_v32  ;;  %v2407_v47 = vadd.f32 %v2308_v40, %v1731_v30  ;;  %v2394_v48 = vadd.f32 %v3461_v42, %v1718_v31  ;;  %v3493_v43 = vpop.f32.mrb[54].mxu1  ;;  %v2166_v49 = vpop.f32.mrb[55].mxu0 }
 0x24d   : > { %2601 = vst.msk [vmem:[%s4225_s29 + $0x190] sm:$0xff] %vm300_vm0, %v2536_v46  ;;  %2583 = vst.msk [vmem:[%s4225_s29 + $0x100] sm:$0xff] %vm300_vm0, %v2518_v54  ;;  %v2534_v50 = vld [vmem:[#allocation2 + $0x180] sm:$0xff]  ;;  %v2521_v51 = vld [vmem:[#allocation2 + $0x118] sm:$0xff]  ;;  %v2410_v53 = vadd.f32 %v3493_v43, %v1734_v35  ;;  %v2392_v55 = vadd.f32 %v2166_v49, %v1716_v36  ;;  %v2311_v56 = vpop.f32.mrb[55].mxu1 }
 0x24e   : > { %2473 = vst.msk [vmem:[#allocation2 + $0x1b0] sm:$0xff] %vm300_vm0, %v2409_v38  ;;  %2455 = vst.msk [vmem:[#allocation2 + $0x120] sm:$0xff] %vm300_vm0, %v2391_v41  ;;  %v2537_v57 = vld [vmem:[#allocation2 + $0x198] sm:$0xff]  ;;  %v2519_v58 = vld [vmem:[#allocation2 + $0x108] sm:$0xff]  ;;  %v2408_v59 = vadd.f32 %v2311_v56, %v1732_v45 }
 0x24f   : > { %2599 = vst.msk [vmem:[%s4225_s29 + $0x180] sm:$0xff] %vm300_vm0, %v2534_v50  ;;  %2586 = vst.msk [vmem:[%s4225_s29 + $0x118] sm:$0xff] %vm300_vm0, %v2521_v51  ;;  %v2535_v60 = vld [vmem:[#allocation2 + $0x188] sm:$0xff]  ;;  %v1741_v13 = vld [vmem:[#allocation2 + $0x1f0] sm:$0xff] }
 0x250   : > { %2471 = vst.msk [vmem:[#allocation2 + $0x1a0] sm:$0xff] %vm300_vm0, %v2407_v47  ;;  %2458 = vst.msk [vmem:[#allocation2 + $0x138] sm:$0xff] %vm300_vm0, %v2394_v48  ;;  %v1739_v30 = vld [vmem:[#allocation2 + $0x1e0] sm:$0xff]  ;;  %v1726_v31 = vld [vmem:[#allocation2 + $0x178] sm:$0xff] }
 0x251   : > { %2602 = vst.msk [vmem:[%s4225_s29 + $0x198] sm:$0xff] %vm300_vm0, %v2537_v57  ;;  %2584 = vst.msk [vmem:[%s4225_s29 + $0x108] sm:$0xff] %vm300_vm0, %v2519_v58  ;;  %v3464_v63 = vpop.f32.mrb[56].mxu0  ;;  %v1742_v35 = vld [vmem:[#allocation2 + $0x1f8] sm:$0xff]  ;;  %v1724_v36 = vld [vmem:[#allocation2 + $0x168] sm:$0xff] }
 0x252   : > { %2474 = vst.msk [vmem:[#allocation2 + $0x1b8] sm:$0xff] %vm300_vm0, %v2410_v53  ;;  %2456 = vst.msk [vmem:[#allocation2 + $0x128] sm:$0xff] %vm300_vm0, %v2392_v55  ;;  %v2397_v2 = vadd.f32 %v3464_v63, %v1721_v61  ;;  %v3496_v3 = vpop.f32.mrb[56].mxu1  ;;  %v2179_v12 = vpop.f32.mrb[57].mxu0  ;;  %v1740_v45 = vld [vmem:[#allocation2 + $0x1e8] sm:$0xff] }
 0x253   : > { %2600 = vst.msk [vmem:[%s4225_s29 + $0x188] sm:$0xff] %vm300_vm0, %v2535_v60  ;;  %2472 = vst.msk [vmem:[#allocation2 + $0x1a8] sm:$0xff] %vm300_vm0, %v2408_v59  ;;  %v2524_v6 = vld [vmem:[#allocation2 + $0x130] sm:$0xff]  ;;  %v2413_v7 = vadd.f32 %v3496_v3, %v1737_v62  ;;  %v2395_v9 = vadd.f32 %v2179_v12, %v1719_v8  ;;  %v2324_v11 = vpop.f32.mrb[57].mxu1  ;;  %v3465_v14 = vpop.f32.mrb[58].mxu0 }
 0x254   : > { %2589 = vst.msk [vmem:[%s4225_s29 + $0x130] sm:$0xff] %vm300_vm0, %v2524_v6  ;;  %2461 = vst.msk [vmem:[#allocation2 + $0x150] sm:$0xff] %vm300_vm0, %v2397_v2  ;;  %v2411_v39 = vadd.f32 %v2324_v11, %v1735_v0  ;;  %v2398_v18 = vadd.f32 %v3465_v14, %v1722_v1  ;;  %v3497_v19 = vpop.f32.mrb[58].mxu1  ;;  %v2182_v20 = vpop.f32.mrb[59].mxu0 }
 0x255   : > { %v2540_v16 = vld [vmem:[#allocation2 + $0x1b0] sm:$0xff]  ;;  %v2522_v17 = vld [vmem:[#allocation2 + $0x120] sm:$0xff]  ;;  %2477 = vst.msk [vmem:[#allocation2 + $0x1d0] sm:$0xff] %vm300_vm0, %v2413_v7  ;;  %2459 = vst.msk [vmem:[#allocation2 + $0x140] sm:$0xff] %vm300_vm0, %v2395_v9  ;;  %v2414_v22 = vadd.f32 %v3497_v19, %v1738_v4  ;;  %v2396_v10 = vadd.f32 %v2182_v20, %v1720_v5  ;;  %v2327_v23 = vpop.f32.mrb[59].mxu1 }
 0x256   : > { %2605 = vst.msk [vmem:[%s4225_s29 + $0x1b0] sm:$0xff] %vm300_vm0, %v2540_v16  ;;  %2587 = vst.msk [vmem:[%s4225_s29 + $0x120] sm:$0xff] %vm300_vm0, %v2522_v17  ;;  %v2412_v26 = vadd.f32 %v2327_v23, %v1736_v15 }
 0x257   : > { %v2538_v21 = vld [vmem:[#allocation2 + $0x1a0] sm:$0xff]  ;;  %v2525_v44 = vld [vmem:[#allocation2 + $0x138] sm:$0xff]  ;;  %2475 = vst.msk [vmem:[#allocation2 + $0x1c0] sm:$0xff] %vm300_vm0, %v2411_v39  ;;  %2462 = vst.msk [vmem:[#allocation2 + $0x158] sm:$0xff] %vm300_vm0, %v2398_v18 }
 0x258   : > { %2603 = vst.msk [vmem:[%s4225_s29 + $0x1a0] sm:$0xff] %vm300_vm0, %v2538_v21  ;;  %2590 = vst.msk [vmem:[%s4225_s29 + $0x138] sm:$0xff] %vm300_vm0, %v2525_v44 }
 0x259   : > { %v2541_v24 = vld [vmem:[#allocation2 + $0x1b8] sm:$0xff]  ;;  %v2523_v25 = vld [vmem:[#allocation2 + $0x128] sm:$0xff]  ;;  %2478 = vst.msk [vmem:[#allocation2 + $0x1d8] sm:$0xff] %vm300_vm0, %v2414_v22  ;;  %2460 = vst.msk [vmem:[#allocation2 + $0x148] sm:$0xff] %vm300_vm0, %v2396_v10  ;;  %v3468_v29 = vpop.f32.mrb[60].mxu0 }
 0x25a   : > { %2606 = vst.msk [vmem:[%s4225_s29 + $0x1b8] sm:$0xff] %vm300_vm0, %v2541_v24  ;;  %2588 = vst.msk [vmem:[%s4225_s29 + $0x128] sm:$0xff] %vm300_vm0, %v2523_v25  ;;  %v2539_v52 = vld [vmem:[#allocation2 + $0x1a8] sm:$0xff]  ;;  %v2401_v32 = vadd.f32 %v3468_v29, %v1725_v27  ;;  %v3500_v33 = vpop.f32.mrb[60].mxu1  ;;  %v2195_v34 = vpop.f32.mrb[61].mxu0 }
 0x25b   : > { %2604 = vst.msk [vmem:[%s4225_s29 + $0x1a8] sm:$0xff] %vm300_vm0, %v2539_v52  ;;  %2476 = vst.msk [vmem:[#allocation2 + $0x1c8] sm:$0xff] %vm300_vm0, %v2412_v26  ;;  %v2528_v37 = vld [vmem:[#allocation2 + $0x150] sm:$0xff]  ;;  %v2417_v38 = vadd.f32 %v3500_v33, %v1741_v13  ;;  %v2399_v41 = vadd.f32 %v2195_v34, %v1723_v28  ;;  %v2340_v40 = vpop.f32.mrb[61].mxu1  ;;  %v3469_v42 = vpop.f32.mrb[62].mxu0 }
 0x25c   : > { %2593 = vst.msk [vmem:[%s4225_s29 + $0x150] sm:$0xff] %vm300_vm0, %v2528_v37  ;;  %v2544_v46 = vld [vmem:[#allocation2 + $0x1d0] sm:$0xff]  ;;  %v2526_v54 = vld [vmem:[#allocation2 + $0x140] sm:$0xff]  ;;  %2465 = vst.msk [vmem:[#allocation2 + $0x170] sm:$0xff] %vm300_vm0, %v2401_v32  ;;  %v2415_v47 = vadd.f32 %v2340_v40, %v1739_v30  ;;  %v2402_v48 = vadd.f32 %v3469_v42, %v1726_v31  ;;  %v3501_v43 = vpop.f32.mrb[62].mxu1  ;;  %v2198_v49 = vpop.f32.mrb[63].mxu0 }
 0x25d   : > { %2609 = vst.msk [vmem:[%s4225_s29 + $0x1d0] sm:$0xff] %vm300_vm0, %v2544_v46  ;;  %2591 = vst.msk [vmem:[%s4225_s29 + $0x140] sm:$0xff] %vm300_vm0, %v2526_v54  ;;  %v2418_v53 = vadd.f32 %v3501_v43, %v1742_v35  ;;  %v2400_v55 = vadd.f32 %v2198_v49, %v1724_v36  ;;  %v2343_v56 = vpop.f32.mrb[63].mxu1 }
 0x25e   : > { %v2542_v50 = vld [vmem:[#allocation2 + $0x1c0] sm:$0xff]  ;;  %v2529_v51 = vld [vmem:[#allocation2 + $0x158] sm:$0xff]  ;;  %2481 = vst.msk [vmem:[#allocation2 + $0x1f0] sm:$0xff] %vm300_vm0, %v2417_v38  ;;  %2463 = vst.msk [vmem:[#allocation2 + $0x160] sm:$0xff] %vm300_vm0, %v2399_v41  ;;  %v2416_v59 = vadd.f32 %v2343_v56, %v1740_v45 }
 0x25f   : > { %2607 = vst.msk [vmem:[%s4225_s29 + $0x1c0] sm:$0xff] %vm300_vm0, %v2542_v50  ;;  %2594 = vst.msk [vmem:[%s4225_s29 + $0x158] sm:$0xff] %vm300_vm0, %v2529_v51 }
 0x260   : > { %v2545_v57 = vld [vmem:[#allocation2 + $0x1d8] sm:$0xff]  ;;  %v2527_v58 = vld [vmem:[#allocation2 + $0x148] sm:$0xff]  ;;  %2479 = vst.msk [vmem:[#allocation2 + $0x1e0] sm:$0xff] %vm300_vm0, %v2415_v47  ;;  %2466 = vst.msk [vmem:[#allocation2 + $0x178] sm:$0xff] %vm300_vm0, %v2402_v48 }
 0x261   : > { %2610 = vst.msk [vmem:[%s4225_s29 + $0x1d8] sm:$0xff] %vm300_vm0, %v2545_v57  ;;  %2592 = vst.msk [vmem:[%s4225_s29 + $0x148] sm:$0xff] %vm300_vm0, %v2527_v58 }
 0x262   : > { %v2543_v60 = vld [vmem:[#allocation2 + $0x1c8] sm:$0xff]  ;;  %2482 = vst.msk [vmem:[#allocation2 + $0x1f8] sm:$0xff] %vm300_vm0, %v2418_v53  ;;  %2464 = vst.msk [vmem:[#allocation2 + $0x168] sm:$0xff] %vm300_vm0, %v2400_v55 }
 0x263   : > { %2608 = vst.msk [vmem:[%s4225_s29 + $0x1c8] sm:$0xff] %vm300_vm0, %v2543_v60  ;;  %2480 = vst.msk [vmem:[#allocation2 + $0x1e8] sm:$0xff] %vm300_vm0, %v2416_v59  ;;  %v2532_v61 = vld [vmem:[#allocation2 + $0x170] sm:$0xff] }
 0x264   : > { %2597 = vst.msk [vmem:[%s4225_s29 + $0x170] sm:$0xff] %vm300_vm0, %v2532_v61 }
 0x265   : > { %v2548_v62 = vld [vmem:[#allocation2 + $0x1f0] sm:$0xff]  ;;  %v2530_v8 = vld [vmem:[#allocation2 + $0x160] sm:$0xff] }
 0x266   : > { %2613 = vst.msk [vmem:[%s4225_s29 + $0x1f0] sm:$0xff] %vm300_vm0, %v2548_v62  ;;  %2595 = vst.msk [vmem:[%s4225_s29 + $0x160] sm:$0xff] %vm300_vm0, %v2530_v8 }
 0x267   : > { %v2546_v63 = vld [vmem:[#allocation2 + $0x1e0] sm:$0xff]  ;;  %v2533_v0 = vld [vmem:[#allocation2 + $0x178] sm:$0xff] }
 0x268   : > { %2611 = vst.msk [vmem:[%s4225_s29 + $0x1e0] sm:$0xff] %vm300_vm0, %v2546_v63  ;;  %2598 = vst.msk [vmem:[%s4225_s29 + $0x178] sm:$0xff] %vm300_vm0, %v2533_v0 }
 0x269   : > { %v2549_v1 = vld [vmem:[#allocation2 + $0x1f8] sm:$0xff]  ;;  %v2531_v2 = vld [vmem:[#allocation2 + $0x168] sm:$0xff] }
 0x26a   : > { %2614 = vst.msk [vmem:[%s4225_s29 + $0x1f8] sm:$0xff] %vm300_vm0, %v2549_v1  ;;  %2596 = vst.msk [vmem:[%s4225_s29 + $0x168] sm:$0xff] %vm300_vm0, %v2531_v2  ;;  %v2547_v3 = vld [vmem:[#allocation2 + $0x1e8] sm:$0xff] }
 0x26b   : > { %2612 = vst.msk [vmem:[%s4225_s29 + $0x1e8] sm:$0xff] %vm300_vm0, %v2547_v3 }
 0x26c PF: > { %s13_s14 = sadd.s32 1, %s3677_s14   ;;  %s4440_s12 = smov %s3673_s13 }
 0x26d   : > { %p10_p5 = scmp.ge.s32.totalorder %s13_s14, 4   ;;  %s4441_s13 = smov %s4443_s15 }
 0x26f   :  { %12 = sbr.rel (!%p10_p5) target bundleno = 2 (0x2), region = 80 }

</bundles_post_ra>
